<compile_context>
chip_gen: v7x
topology: tpu7x:2x2x1
jax: 0.10.0
libtpu: 0.0.40
codegen_flags: <defaults>
</compile_context>

<pallas_src>
import jax
import jax.numpy as jnp
import numpy as np
from jax.experimental import pallas as pl
from jax.experimental.pallas import tpu as pltpu


def _round_up(x, m):
    return ((x + m - 1) // m) * m


def _round_down(x, m):
    return (x // m) * m


def _choose_tile(n, tile_n, in_f, out_f, *, min_grid=4, vmem_budget=24 << 20):
    """Lane-aligned (multiple of 128) column-tile size.

    Goals: large tiles (few ~0.35us grid steps, big DMAs), grid >= min_grid
    when there is enough work (v7x: 2 TCs x >=2 steps/core), and the
    double-buffered coords/output blocks fit a conservative VMEM budget that
    stays under the default scoped limits of v5e/v6e/v7x.
    """
    n_lane = _round_up(n, 128)
    tile = max(128, min(_round_up(tile_n, 128), n_lane))
    if n_lane >= min_grid * 128:
        tile = min(tile, max(128, _round_down(n_lane // min_grid, 128)))
    bytes_per_col = 2 * (in_f + out_f) * 4          # double-buffered f32 blocks
    tile = min(tile, max(128, _round_down(vmem_budget // bytes_per_col, 128)))
    return tile


# ---------------------------------------------------------------------------
# Pallas kernel: full SIREN MLP hot path for one column-tile of points.
# All tensors are feature-major: x block is [in_f, tile], intermediates are
# [H, chunk], output block is [out_f, tile].  Omega is already folded into the
# weights/biases by the wrapper.
# ---------------------------------------------------------------------------
def _make_siren_kernel(num_chunks, chunk):
    def kernel(x_ref, w0_ref, b0_ref, w1_ref, b1_ref, w2_ref, b2_ref,
               w3_ref, b3_ref, o_ref):
        # Params are tiny (H=32): load once, keep resident across the chunk loop.
        w0 = w0_ref[...]; b0 = b0_ref[...]
        w1 = w1_ref[...]; b1 = b1_ref[...]
        w2 = w2_ref[...]; b2 = b2_ref[...]
        w3 = w3_ref[...]; b3 = b3_ref[...]

        # Run the whole 4-layer chain chunk-by-chunk along the lane (batch)
        # axis so intermediates never round-trip through VMEM between layers.
        @pl.loop(0, num_chunks)
        def _(c):
            col = pl.multiple_of(c * chunk, chunk)
            x = x_ref[:, pl.ds(col, chunk)]                       # [in_f, chunk]
            # Layer 0: first SineLayer (omega folded into w0/b0).
            h = jnp.sin(jnp.dot(w0, x, preferred_element_type=jnp.float32) + b0)
            # Layers 1-2: hidden SineLayers (omega folded into w1/b1, w2/b2).
            h = jnp.sin(jnp.dot(w1, h, preferred_element_type=jnp.float32) + b1)
            h = jnp.sin(jnp.dot(w2, h, preferred_element_type=jnp.float32) + b2)
            # Layer 3: outermost Linear (no activation).
            out = jnp.dot(w3, h, preferred_element_type=jnp.float32) + b3
            o_ref[:, pl.ds(col, chunk)] = out.astype(o_ref.dtype)  # [out_f, chunk]

    return kernel


def siren_forward(coords, params, *, first_omega_0, hidden_omega_0,
                  tile_n=32768, chunk=512, coords_feature_major=False):
    """Run the SIREN MLP. Returns (output, coords) like Network.forward.

    coords: [N, in_features], or [in_features, N] when coords_feature_major
            (skips the wrapper relayout pass entirely).
    params: list of (weight [out, in], bias [out]) in PyTorch layout.
    """
    (w0, b0), (w1, b1), (w2, b2), (w3, b3) = params
    if coords_feature_major:
        in_f, N = coords.shape
        x_t = coords
    else:
        N, in_f = coords.shape
        # TODO(synk): emit coords feature-major upstream to drop this relayout.
        x_t = coords.T
    H = w0.shape[0]
    out_f = w3.shape[0]

    # Fold omega into weights/biases once (acts on params, not activations):
    #   sin(omega*(W x + b)) == sin((omega*W) x + (omega*b))
    f32 = jnp.float32
    w0s = (first_omega_0 * w0).astype(f32)
    b0s = (first_omega_0 * b0).astype(f32).reshape(H, 1)
    w1s = (hidden_omega_0 * w1).astype(f32)
    b1s = (hidden_omega_0 * b1).astype(f32).reshape(H, 1)
    w2s = (hidden_omega_0 * w2).astype(f32)
    b2s = (hidden_omega_0 * b2).astype(f32).reshape(H, 1)
    w3c = w3.astype(f32)
    b3c = b3.astype(f32).reshape(out_f, 1)

    tile = _choose_tile(N, tile_n, in_f, out_f)
    chunk = max(128, _round_down(min(chunk, tile), 128))
    while tile % chunk:                 # chunk must evenly divide the tile
        chunk -= 128
    num_chunks = tile // chunk
    grid = pl.cdiv(N, tile)             # last block OOB-masked by Pallas; no pad

    kernel = _make_siren_kernel(num_chunks, chunk)

    n_params = int(w0s.size + w1s.size + w2s.size + w3c.size
                   + b0s.size + b1s.size + b2s.size + b3c.size)
    cost = pl.CostEstimate(
        flops=2 * N * (in_f * H + 2 * H * H + H * out_f),
        transcendentals=3 * H * N,
        bytes_accessed=4 * (N * (in_f + out_f) + n_params),
    )

    full = lambda shape: pl.BlockSpec(shape, lambda i: (0, 0))

    out_t = pl.pallas_call(
        kernel,
        out_shape=jax.ShapeDtypeStruct((out_f, N), coords.dtype),
        grid_spec=pl.GridSpec(
            grid=(grid,),
            in_specs=[
                pl.BlockSpec((in_f, tile), lambda i: (0, i)),     # coords tile
                full((H, in_f)), full((H, 1)),                    # layer 0
                full((H, H)),    full((H, 1)),                    # layer 1
                full((H, H)),    full((H, 1)),                    # layer 2
                full((out_f, H)), full((out_f, 1)),               # final linear
            ],
            out_specs=pl.BlockSpec((out_f, tile), lambda i: (0, i)),
        ),
        compiler_params=pltpu.CompilerParams(
            dimension_semantics=("parallel",),
            vmem_limit_bytes=32 << 20),
        cost_estimate=cost,
    )(x_t, w0s, b0s, w1s, b1s, w2s, b2s, w3c, b3c)

    # [out_f, N] -> [N, out_f]; for out_f == 1 this is a layout-free reshape.
    out = out_t.T
    return out, coords


# ---------------------------------------------------------------------------
# Deterministic parameter initialization mirroring the PyTorch module's
# __init__ (SineLayer init + nn.Linear default bias init). Weights are stored
# in PyTorch layout [out_features, in_features].
# ---------------------------------------------------------------------------
def init_params(key, in_features, hidden_features, out_features,
                hidden_layers, c, first_omega_0, hidden_omega_0):
    def uniform(k, shape, lo, hi):
        return jax.random.uniform(k, shape, jnp.float32, minval=lo, maxval=hi)

    keys = jax.random.split(key, 2 * (hidden_layers + 2))
    params = []
    ki = 0

    # First SineLayer: weight ~ U(-1/in, 1/in)
    bound_w = 1.0 / in_features
    bound_b = 1.0 / np.sqrt(in_features)          # nn.Linear default bias init
    w = uniform(keys[ki], (hidden_features, in_features), -bound_w, bound_w); ki += 1
    b = uniform(keys[ki], (hidden_features,), -bound_b, bound_b); ki += 1
    params.append((w, b))

    # Hidden SineLayers: weight ~ U(-sqrt(c/in)/omega, sqrt(c/in)/omega)
    for _ in range(hidden_layers):
        bound_w = np.sqrt(c / hidden_features) / hidden_omega_0
        bound_b = 1.0 / np.sqrt(hidden_features)
        w = uniform(keys[ki], (hidden_features, hidden_features), -bound_w, bound_w); ki += 1
        b = uniform(keys[ki], (hidden_features,), -bound_b, bound_b); ki += 1
        params.append((w, b))

    # Final Linear (outermost_linear=True): weight re-init'd to SineLayer bound.
    bound_w = np.sqrt(c / hidden_features) / hidden_omega_0
    bound_b = 1.0 / np.sqrt(hidden_features)
    w = uniform(keys[ki], (out_features, hidden_features), -bound_w, bound_w); ki += 1
    b = uniform(keys[ki], (out_features,), -bound_b, bound_b); ki += 1
    params.append((w, b))

    return params


# ---------------------------------------------------------------------------
# Pure-JAX reference (PyTorch semantics: x @ W.T + b) for correctness checks.
# ---------------------------------------------------------------------------
def siren_forward_ref(coords, params, *, first_omega_0, hidden_omega_0):
    (w0, b0), (w1, b1), (w2, b2), (w3, b3) = params
    h = jnp.sin(first_omega_0 * (coords @ w0.T + b0))
    h = jnp.sin(hidden_omega_0 * (h @ w1.T + b1))
    h = jnp.sin(hidden_omega_0 * (h @ w2.T + b2))
    return h @ w3.T + b3


if __name__ == "__main__":
    # Small shapes consistent with the module: coords = [N, in_features].
    in_features = 2
    hidden_features = 32
    out_features = 1
    hidden_layers = 2
    c = 6
    first_omega_0 = 30.0
    hidden_omega_0 = 30.0

    key = jax.random.PRNGKey(0)
    k_c1, k_c2, k_params = jax.random.split(key, 3)

    params = init_params(k_params, in_features, hidden_features, out_features,
                         hidden_layers, c, first_omega_0, hidden_omega_0)

    # --- Case 1: N not a multiple of 128 -> exercises the masked tail block
    #             introduced by dropping jnp.pad / the output slice.
    N1 = 421
    coords1 = jax.random.uniform(k_c1, (N1, in_features), jnp.float32,
                                 minval=-1.0, maxval=1.0)
    out1, coords_out1 = siren_forward(coords1, params,
                                      first_omega_0=first_omega_0,
                                      hidden_omega_0=hidden_omega_0,
                                      tile_n=256, chunk=128)
    jax.block_until_ready(out1)
    ref1 = siren_forward_ref(coords1, params, first_omega_0=first_omega_0,
                             hidden_omega_0=hidden_omega_0)
    np.testing.assert_allclose(np.asarray(out1), np.asarray(ref1),
                               rtol=1e-5, atol=5e-5)
    assert out1.shape == (N1, out_features)
    assert coords_out1.shape == coords1.shape

    # --- Case 2: multi-chunk inner loop + feature-major (no-transpose) path.
    N2 = 2048
    coords2 = jax.random.uniform(k_c2, (N2, in_features), jnp.float32,
                                 minval=-1.0, maxval=1.0)
    ref2 = siren_forward_ref(coords2, params, first_omega_0=first_omega_0,
                             hidden_omega_0=hidden_omega_0)
    out2, _ = siren_forward(coords2, params, first_omega_0=first_omega_0,
                            hidden_omega_0=hidden_omega_0,
                            tile_n=1024, chunk=256)
    out2_fm, _ = siren_forward(coords2.T, params, first_omega_0=first_omega_0,
                               hidden_omega_0=hidden_omega_0,
                               tile_n=1024, chunk=256,
                               coords_feature_major=True)
    jax.block_until_ready((out2, out2_fm))
    np.testing.assert_allclose(np.asarray(out2), np.asarray(ref2),
                               rtol=1e-5, atol=5e-5)
    np.testing.assert_allclose(np.asarray(out2_fm), np.asarray(ref2),
                               rtol=1e-5, atol=5e-5)

    print("KERNEL_OK")
</pallas_src>

<mosaic_0001>
module attributes {stable_mosaic.version = 11 : i64} {
  func.func @kernel(%arg0: i32, %arg1: memref<2x128xf32, #tpu.memory_space<vmem>>, %arg2: memref<32x2xf32, #tpu.memory_space<vmem>>, %arg3: memref<32x1xf32, #tpu.memory_space<vmem>>, %arg4: memref<32x32xf32, #tpu.memory_space<vmem>>, %arg5: memref<32x1xf32, #tpu.memory_space<vmem>>, %arg6: memref<32x32xf32, #tpu.memory_space<vmem>>, %arg7: memref<32x1xf32, #tpu.memory_space<vmem>>, %arg8: memref<1x32xf32, #tpu.memory_space<vmem>>, %arg9: memref<1x1xf32, #tpu.memory_space<vmem>>, %arg10: memref<1x128xf32, #tpu.memory_space<vmem>>) attributes {dimension_semantics = [#tpu.dimension_semantics<parallel>], iteration_bounds = array<i64: 4>, scalar_prefetch = 0 : i64, scratch_operands = 0 : i64, tpu.core_type = #tpu.core_type<tc>, window_params = [{transform_indices = @transform_0, window_bounds = array<i64: 2, 128>}, {pipeline_mode = #tpu.pipeline_mode<synchronous>, transform_indices = @transform_1, window_bounds = array<i64: 32, 2>}, {pipeline_mode = #tpu.pipeline_mode<synchronous>, transform_indices = @transform_2, window_bounds = array<i64: 32, 1>}, {pipeline_mode = #tpu.pipeline_mode<synchronous>, transform_indices = @transform_3, window_bounds = array<i64: 32, 32>}, {pipeline_mode = #tpu.pipeline_mode<synchronous>, transform_indices = @transform_4, window_bounds = array<i64: 32, 1>}, {pipeline_mode = #tpu.pipeline_mode<synchronous>, transform_indices = @transform_5, window_bounds = array<i64: 32, 32>}, {pipeline_mode = #tpu.pipeline_mode<synchronous>, transform_indices = @transform_6, window_bounds = array<i64: 32, 1>}, {pipeline_mode = #tpu.pipeline_mode<synchronous>, transform_indices = @transform_7, window_bounds = array<i64: 1, 32>}, {pipeline_mode = #tpu.pipeline_mode<synchronous>, transform_indices = @transform_8, window_bounds = array<i64: 1, 1>}, {transform_indices = @transform_9, window_bounds = array<i64: 1, 128>}]} {
    %c0 = arith.constant 0 : index
    %c0_0 = arith.constant 0 : index
    %0 = vector.load %arg2[%c0, %c0_0] : memref<32x2xf32, #tpu.memory_space<vmem>>, vector<32x2xf32>
    %c0_1 = arith.constant 0 : index
    %c0_2 = arith.constant 0 : index
    %1 = vector.load %arg3[%c0_1, %c0_2] : memref<32x1xf32, #tpu.memory_space<vmem>>, vector<32x1xf32>
    %c0_3 = arith.constant 0 : index
    %c0_4 = arith.constant 0 : index
    %2 = vector.load %arg4[%c0_3, %c0_4] : memref<32x32xf32, #tpu.memory_space<vmem>>, vector<32x32xf32>
    %c0_5 = arith.constant 0 : index
    %c0_6 = arith.constant 0 : index
    %3 = vector.load %arg5[%c0_5, %c0_6] : memref<32x1xf32, #tpu.memory_space<vmem>>, vector<32x1xf32>
    %c0_7 = arith.constant 0 : index
    %c0_8 = arith.constant 0 : index
    %4 = vector.load %arg6[%c0_7, %c0_8] : memref<32x32xf32, #tpu.memory_space<vmem>>, vector<32x32xf32>
    %c0_9 = arith.constant 0 : index
    %c0_10 = arith.constant 0 : index
    %5 = vector.load %arg7[%c0_9, %c0_10] : memref<32x1xf32, #tpu.memory_space<vmem>>, vector<32x1xf32>
    %c0_11 = arith.constant 0 : index
    %c0_12 = arith.constant 0 : index
    %6 = vector.load %arg8[%c0_11, %c0_12] : memref<1x32xf32, #tpu.memory_space<vmem>>, vector<1x32xf32>
    %c0_13 = arith.constant 0 : index
    %c0_14 = arith.constant 0 : index
    %7 = vector.load %arg9[%c0_13, %c0_14] : memref<1x1xf32, #tpu.memory_space<vmem>>, vector<1x1xf32>
    %c0_i32 = arith.constant 0 : i32
    %c1_i32 = arith.constant 1 : i32
    %8 = arith.muli %c0_i32, %c1_i32 : i32
    %c0_i32_15 = arith.constant 0 : i32
    %9 = arith.addi %c0_i32_15, %8 : i32
    %c128_i32 = arith.constant 128 : i32
    %10 = arith.muli %9, %c128_i32 : i32
    %11 = tpu.assume_multiple %10, 128 : i32
    %c0_16 = arith.constant 0 : index
    %12 = arith.index_cast %11 : i32 to index
    %13 = vector.load %arg1[%c0_16, %12] : memref<2x128xf32, #tpu.memory_space<vmem>>, vector<2x128xf32>
    %cst = arith.constant dense<0.000000e+00> : vector<32x128xf32>
    %14 = tpu.matmul %0, %13, %cst {dimension_numbers = #tpu.dot_dimension_numbers<[1], [0], [0], [1], [0, 0, 1, 1], [], []>} : vector<32x2xf32>, vector<2x128xf32>, vector<32x128xf32> -> vector<32x128xf32>
    %15 = vector.broadcast %1 : vector<32x1xf32> to vector<32x128xf32>
    %16 = arith.addf %14, %15 : vector<32x128xf32>
    %17 = math.sin %16 : vector<32x128xf32>
    %cst_17 = arith.constant dense<0.000000e+00> : vector<32x128xf32>
    %18 = tpu.matmul %2, %17, %cst_17 {dimension_numbers = #tpu.dot_dimension_numbers<[1], [0], [0], [1], [0, 0, 1, 1], [], []>} : vector<32x32xf32>, vector<32x128xf32>, vector<32x128xf32> -> vector<32x128xf32>
    %19 = vector.broadcast %3 : vector<32x1xf32> to vector<32x128xf32>
    %20 = arith.addf %18, %19 : vector<32x128xf32>
    %21 = math.sin %20 : vector<32x128xf32>
    %cst_18 = arith.constant dense<0.000000e+00> : vector<32x128xf32>
    %22 = tpu.matmul %4, %21, %cst_18 {dimension_numbers = #tpu.dot_dimension_numbers<[1], [0], [0], [1], [0, 0, 1, 1], [], []>} : vector<32x32xf32>, vector<32x128xf32>, vector<32x128xf32> -> vector<32x128xf32>
    %23 = vector.broadcast %5 : vector<32x1xf32> to vector<32x128xf32>
    %24 = arith.addf %22, %23 : vector<32x128xf32>
    %25 = math.sin %24 : vector<32x128xf32>
    %cst_19 = arith.constant dense<0.000000e+00> : vector<1x128xf32>
    %26 = tpu.matmul %6, %25, %cst_19 {dimension_numbers = #tpu.dot_dimension_numbers<[1], [0], [0], [1], [0, 0, 1, 1], [], []>} : vector<1x32xf32>, vector<32x128xf32>, vector<1x128xf32> -> vector<1x128xf32>
    %27 = vector.broadcast %7 : vector<1x1xf32> to vector<1x128xf32>
    %28 = arith.addf %26, %27 : vector<1x128xf32>
    %c0_20 = arith.constant 0 : index
    %29 = arith.index_cast %11 : i32 to index
    %30 = vector.load %arg10[%c0_20, %29] : memref<1x128xf32, #tpu.memory_space<vmem>>, vector<1x128xf32>
    tpu.vector_store %arg10[%c0_20, %29], %28 {strides = array<i32>} : memref<1x128xf32, #tpu.memory_space<vmem>>, vector<1x128xf32>,
    %c1_i32_21 = arith.constant 1 : i32
    return
  }
  func.func @transform_0(%arg0: i32) -> (i32, i32) {
    %c0_i32 = arith.constant 0 : i32
    %c0_i32_0 = arith.constant 0 : i32
    return %c0_i32, %arg0 : i32, i32
  }
  func.func @transform_1(%arg0: i32) -> (i32, i32) {
    %c0_i32 = arith.constant 0 : i32
    %c0_i32_0 = arith.constant 0 : i32
    %c0_i32_1 = arith.constant 0 : i32
    return %c0_i32, %c0_i32_0 : i32, i32
  }
  func.func @transform_2(%arg0: i32) -> (i32, i32) {
    %c0_i32 = arith.constant 0 : i32
    %c0_i32_0 = arith.constant 0 : i32
    %c0_i32_1 = arith.constant 0 : i32
    return %c0_i32, %c0_i32_0 : i32, i32
  }
  func.func @transform_3(%arg0: i32) -> (i32, i32) {
    %c0_i32 = arith.constant 0 : i32
    %c0_i32_0 = arith.constant 0 : i32
    %c0_i32_1 = arith.constant 0 : i32
    return %c0_i32, %c0_i32_0 : i32, i32
  }
  func.func @transform_4(%arg0: i32) -> (i32, i32) {
    %c0_i32 = arith.constant 0 : i32
    %c0_i32_0 = arith.constant 0 : i32
    %c0_i32_1 = arith.constant 0 : i32
    return %c0_i32, %c0_i32_0 : i32, i32
  }
  func.func @transform_5(%arg0: i32) -> (i32, i32) {
    %c0_i32 = arith.constant 0 : i32
    %c0_i32_0 = arith.constant 0 : i32
    %c0_i32_1 = arith.constant 0 : i32
    return %c0_i32, %c0_i32_0 : i32, i32
  }
  func.func @transform_6(%arg0: i32) -> (i32, i32) {
    %c0_i32 = arith.constant 0 : i32
    %c0_i32_0 = arith.constant 0 : i32
    %c0_i32_1 = arith.constant 0 : i32
    return %c0_i32, %c0_i32_0 : i32, i32
  }
  func.func @transform_7(%arg0: i32) -> (i32, i32) {
    %c0_i32 = arith.constant 0 : i32
    %c0_i32_0 = arith.constant 0 : i32
    %c0_i32_1 = arith.constant 0 : i32
    return %c0_i32, %c0_i32_0 : i32, i32
  }
  func.func @transform_8(%arg0: i32) -> (i32, i32) {
    %c0_i32 = arith.constant 0 : i32
    %c0_i32_0 = arith.constant 0 : i32
    %c0_i32_1 = arith.constant 0 : i32
    return %c0_i32, %c0_i32_0 : i32, i32
  }
  func.func @transform_9(%arg0: i32) -> (i32, i32) {
    %c0_i32 = arith.constant 0 : i32
    %c0_i32_0 = arith.constant 0 : i32
    return %c0_i32, %arg0 : i32, i32
  }
}

</mosaic_0001>

<bundles_post_ra>
// kernel: tpu_custom_call.1
= control target key start
LH: loop header
LB: loop body
LE: loop exit
PB: predicated region body
PF: predicated region fallthrough
CT: control target
= control target key end

     0   :  { %s3603_s0 = inlined_call_operand.vmem [shape: f32[2,421], index: 0, kind: input, shape index: {}]   ;;  %s3604_s1 = inlined_call_operand.vmem [shape: f32[32,2], index: 1, kind: input, shape index: {}]   ;;  %s3605_s2 = inlined_call_operand.vmem [shape: f32[32,1], index: 2, kind: input, shape index: {}]   ;;  %s3606_s3 = inlined_call_operand.vmem [shape: f32[32,32], index: 3, kind: input, shape index: {}]   ;;  %s3607_s4 = inlined_call_operand.vmem [shape: f32[32,1], index: 4, kind: input, shape index: {}]   ;;  %s3608_s5 = inlined_call_operand.vmem [shape: f32[32,32], index: 5, kind: input, shape index: {}]   ;;  %s3609_s6 = inlined_call_operand.vmem [shape: f32[32,1], index: 6, kind: input, shape index: {}]   ;;  %s3610_s7 = inlined_call_operand.vmem [shape: f32[1,32], index: 7, kind: input, shape index: {}]   ;;  %s3611_s8 = inlined_call_operand.<no memory space> [shape: f32[1,1], index: 8, kind: input, shape index: {}]   ;;  %s3612_s9 = inlined_call_operand.hbm [shape: f32[1,421], index: 9, kind: output, shape index: {}]  }
   0x1   :  { %v14_v0 = vstv %s3611_s8 }
   0x2   :  { %15 = vst [vmem:[#allocation2] sm:$0x1] %v14_v0 }
   0x3   :  { %16 = vsyncpa [#allocation4], 0 }
   0x4   :  { %18 = vsyncpa [#allocation4 + $0x1], 0  ;;  %s2552_s11 = smov 0   ;;  %s2554_s12 = smov 0  }
   0x5   :  { %s2556_s13 = smov 0   ;;  %s2558_s14 = smov 0  }
   0x6 LB: > { %s2573_s8 = sadd.s32 4294967295, %s2486_s14   ;;  %s2112_s15 = sadd.s32 4294967294, %s2486_s14   ;;  %s2486_s14 = sphi %s2558_s14, %s3636_s14   ;;  %s2482_s13 = sphi %s2556_s13, %s3635_s13   ;;  %s2478_s12 = sphi %s2554_s12, %s3634_s12   ;;  %s2474_s11 = sphi %s2552_s11, %s3633_s11  }
   0x7   : > { %s2577_s16 = sadd.s32 1, %s2486_s14   ;;  %s225_s17 = sadd.s32 1, %s2482_s13 }
   0x8   : > { %s222_s18 = ssub.s32 %s2486_s14, %s2577_s16  ;;  %p235_p0 = scmp.ne.s32.totalorder %s2482_s13, %s2478_s12 }
   0x9   : > { %p223_p1 = scmp.eq.s32.totalorder %s222_s18, 0  ;;  %p236_p2 = scmp.eq.s32.totalorder %s2573_s8, 3 }
   0xa   : > { %p241_p3 = scmp.ne.s32.totalorder %s2478_s12, %s2474_s11  ;;  %p242_p4 = scmp.eq.s32.totalorder %s2112_s15, 3 }
   0xb   : > { %s2588_s19 = scalar_select %p223_p1, %s2482_s13, %s225_s17  }
   0xc   : > { %p2590_p5 = por %p236_p2, %p235_p0  ;;  %p2594_p6 = por %p242_p4, %p241_p3 }
   0xd   : > { %p2115_p7 = scmp.ge.s32.totalorder %s2486_s14, 1  ;;  %p291_p8 = scmp.lt.s32.totalorder %s2486_s14, 5 }
   0xf   : > { %p292_p9 = pnand %p2115_p7, %p291_p8 }
  0x10   : > { %p325_p10 = scmp.lt.s32.totalorder (!%p292_p9), %s2573_s8, 3  ;;  %v329_v1 = vld [vmem:[%s3604_s1] sm:$0xff] (!%p292_p9)  ;;  %vm376_vm0 = vcmask (!%p292_p9), 15360   ;;  %v2488_v3 = vmov (!%p292_p9), 0   ;;  %v335_v4 = vld [vmem:[%s3605_s2 + $0x10] sm:$0xff] (!%p292_p9)  ;;  %vm389_vm1 = vcmask (!%p292_p9), 1041408  }
  0x11   : > { %295 = sbr.rel (%p292_p9) target bundleno = 1312 (0x520), region = 56  ;;  %2210 = vmatprep.mubr.msk.f32.mxu0 (!%p292_p9), %vm376_vm0, %v329_v1  ;;  %v333_v2 = vld [vmem:[%s3605_s2] sm:$0xff] (!%p292_p9)  ;;  %2374 = vset.pattern.permute.xlu0 (!%p292_p9), %v2488_v3  ;;  %v334_v5 = vld [vmem:[%s3605_s2 + $0x8] sm:$0xff] (!%p292_p9)  ;;  %v336_v6 = vld [vmem:[%s3605_s2 + $0x18] sm:$0xff] (!%p292_p9)  ;;  %v2489_v63 = vmov (!%p292_p9), 683565275  }
  0x12   : > { %2375 = vset.pattern.permute.xlu1 (!%p292_p9), %v2488_v3  ;;  %358 = vperm.xlu0 (!%p292_p9), %2374, %v333_v2   ;;  %v330_v8 = vld [vmem:[%s3604_s1 + $0x8] sm:$0xff] (!%p292_p9)  ;;  %v331_v9 = vld [vmem:[%s3604_s1 + $0x10] sm:$0xff] (!%p292_p9)  ;;  %v341_v10 = vld [vmem:[%s3607_s4] sm:$0xff] (!%p292_p9)  ;;  %v2490_v1 = vmov (!%p292_p9), 2475754826   ;;  %vm914_vm14 = vcmask (!%p292_p9), 261120  }
  0x13   : > { %368 = vperm.xlu1 (!%p292_p9), %2375, %v335_v4   ;;  %v342_v11 = vld [vmem:[%s3607_s4 + $0x8] sm:$0xff] (!%p292_p9)  ;;  %v332_v12 = vld [vmem:[%s3604_s1 + $0x18] sm:$0xff] (!%p292_p9)  ;;  %v343_v13 = vld [vmem:[%s3607_s4 + $0x10] sm:$0xff] (!%p292_p9)  ;;  %v2491_v4 = vmov (!%p292_p9), 2131351028   ;;  %s323_s25 = sand.u32 (!%p292_p9), 1, %s2478_s12  }
  0x14   : > { %v344_v14 = vld [vmem:[%s3607_s4 + $0x18] sm:$0xff] (!%p292_p9)  ;;  %v349_v15 = vld [vmem:[%s3609_s6] sm:$0xff] (!%p292_p9)  ;;  %v350_v16 = vld [vmem:[%s3609_s6 + $0x8] sm:$0xff] (!%p292_p9)  ;;  %s324_s27 = scalar_lea.vmem (!%p292_p9), [#allocation3], %s323_s25  ;;  %s2045_s15 = scalar_lea.sflag (!%p292_p9), [#allocation4], %s323_s25 }
  0x15   : > { %v351_v17 = vld [vmem:[%s3609_s6 + $0x10] sm:$0xff] (!%p292_p9)  ;;  %v352_v18 = vld [vmem:[%s3609_s6 + $0x18] sm:$0xff] (!%p292_p9)  ;;  %v354_v19 = vld [vmem:[#allocation2] sm:$0x1] (!%p292_p9)  ;;  %s2057_s28 = sshll.u32 (!%p292_p9), %s324_s27, 4  ;;  %s3563_s28 = int_to_ptr.vmem [resolvable:$true] %s2057_s28 }
  0x16   : > { %363 = vperm.xlu0 (!%p292_p9), %2374, %v334_v5   ;;  %s2424_s17 = scalar_lea.vmem (!%p292_p9), %s3563_s28, 16 }
  0x17   : > { %373 = vperm.xlu1 (!%p292_p9), %2375, %v336_v6   ;;  %v2492_v6 = vmov (!%p292_p9), 2102212464   ;;  %p2425_p11 = scmp.ne.s32.totalorder (!%p292_p9), %s3563_s28, %s2424_s17 }
  0x18   : > { %s326_s26 = scalar_select %p325_p10, %s2573_s8, 3 }
  0x19   : > { %p2426_p12 = pnand %p2425_p11, %p2590_p5 }
  0x1a   : > { %s2116_s29 = sshll.u32 %s326_s26, 1  ;;  %896 = vperm.xlu0 %2374, %v341_v10   ;;  %s2179_s26 = sshll.u32 %s2573_s8, 4 }
  0x1b   : > { %s328_s18 = scalar_lea.vmem %s3603_s0, %s2116_s29  ;;  %901 = vperm.xlu1 %2375, %v342_v11   ;;  %s3561_s10 = scalar_lea.hbm %s3612_s9, %s2179_s26 }
  0x1c   : > { %v355_v7 = vld [vmem:[%s328_s18] sm:$0x3]  ;;  %p2427_p13 = pneg %p2426_p12  ;;  %s2498_s8 = smov [#allocation3]  }
  0x1d   : > { %2208 = vmatprep.subr.msk.mxu0 %vm389_vm1, %v355_v7  ;;  %s2428_s18 = sshll.u32 %s2498_s8, 4  ;;  %s2429_s18 = int_to_ptr.vmem [resolvable:$false] %s2428_s18 }
  0x1e   : > { %2209 = vmatpush3.msk.msra.mxu0 %vm389_vm1, %v355_v7  ;;  %906 = vperm.xlu0 %2374, %v343_v13   ;;  %s2430_s22 = scalar_lea.vmem %s2429_s18, 32  ;;  %p2431_p0 = scmp.lt.s32.totalorder %s3563_s28, %s2429_s18 }
  0x1f   : > { %2211 = vmatmul.mubr.msk.f32.vlgmr.msra.gmra.mrb[0].mxu0 %vm376_vm0, %v330_v8  ;;  %911 = vperm.xlu1 %2375, %v344_v14   ;;  %v2493_v8 = vmov 920167782   ;;  %p2432_p1 = scmp.lt.s32.totalorder %s2430_s22, %s2424_s17 }
  0x20   : > { %2213 = vmatprep.mubr.msk.f32.mxu0 %vm376_vm0, %v331_v9 }
  0x21   : > { %p2433_p2 = por %p2432_p1, %p2431_p0 }
  0x22   : > { %1430 = vperm.xlu0 %2374, %v349_v15   ;;  %v2494_v15 = vmov 1326507024  }
  0x23   : > { %2214 = vmatmul.mubr.msk.f32.gmra.mrb[2].mxu0 %vm376_vm0, %v332_v12  ;;  %1435 = vperm.xlu1 %2375, %v350_v16   ;;  %p2434_p3 = pnand %p2433_p2, %p2427_p13 }
  0x26   : > { %1440 = vperm.xlu0 %2374, %v351_v17  }
  0x27   : > { %1445 = vperm.xlu1 %2375, %v352_v18  }
  0x2a   : > { %1963 = vperm.xlu0 %2374, %v354_v19  }
  0x91   : > { %v359_v20 = vpop.permute.xlu0 %358 }
  0x92   : > { %v369_v21 = vpop.permute.xlu1 %368 }
  0x95   : > { %v364_v22 = vpop.permute.xlu0 %363 }
  0x96   : > { %v374_v29 = vpop.permute.xlu1 %373 }
  0xf2   : > { %v2212_v23 = vpop.f32.mrb[0].mxu0 }
  0xf3   : > { %v2657_v24 = vadd.f32 %v2212_v23, %v364_v22  ;;  %v459_v25 = vpop.f32.mrb[1].mxu0 }
  0xf4   : > { %v2659_v26 = vadd.f32 %v459_v25, %v359_v20 }
  0xf5   : > { %v582_v27 = vand.u32 2147483647, %v2657_v24  ;;  %v585_v28 = vand.u32 2139095040, %v2657_v24 }
  0xf6   : > { %v478_v30 = vand.u32 2147483647, %v2659_v26  ;;  %v481_v31 = vand.u32 2139095040, %v2659_v26  ;;  %v2215_v32 = vpop.f32.mrb[2].mxu0 }
  0xf7   : > { %v586_v33 = vshrl.u32 %v585_v28, 23  ;;  %v589_v34 = vand.u32 8388607, %v582_v27  ;;  %v2667_v35 = vadd.f32 %v2215_v32, %v374_v29  ;;  %v469_v36 = vpop.f32.mrb[3].mxu0 }
  0xf8   : > { %v482_v37 = vshrl.u32 %v481_v31, 23  ;;  %v485_v38 = vand.u32 8388607, %v478_v30  ;;  %v2672_v41 = vadd.f32 %v469_v36, %v369_v21 }
  0xf9   : > { %v2126_v39 = vadd.s32 4294967169, %v586_v33  ;;  %v790_v40 = vand.u32 2147483647, %v2667_v35  ;;  %v590_v42 = vor.u32 8388608, %v589_v34  ;;  %v793_v44 = vand.u32 2139095040, %v2667_v35 }
  0xfa   : > { %v2122_v43 = vadd.s32 4294967169, %v482_v37  ;;  %v486_v46 = vor.u32 8388608, %v485_v38  ;;  %v686_v50 = vand.u32 2147483647, %v2672_v41  ;;  %v689_v61 = vand.u32 2139095040, %v2672_v41 }
  0xfb   : > { %v592_v45 = vadd.s32 1, %v2126_v39  ;;  %v794_v48 = vshrl.u32 %v793_v44, 23  ;;  %v2677_v49 = vand.u32 8388607, %v790_v40  ;;  %v2680_v52 = vshll.u32 %v590_v42, 8 }
  0xfc   : > { %v488_v47 = vadd.s32 1, %v2122_v43  ;;  %v2682_v57 = vshll.u32 %v486_v46, 8 }
  0xfd   : > { %vm593_vm2 = vcmp.gt.s32.totalorder %v592_v45, 0  ;;  %v2134_v53 = vadd.s32 4294967169, %v794_v48  ;;  %v798_v60 = vor.u32 8388608, %v2677_v49 }
  0xfe   : > { %v594_v51 = vsel %vm593_vm2, %v592_v45, 0  ;;  %vm489_vm3 = vcmp.gt.s32.totalorder %v488_v47, 0 }
  0xff   : > { %v595_v54 = vshrl.u32 %v594_v51, 5  ;;  %v596_v55 = vand.u32 31, %v594_v51  ;;  %v490_v56 = vsel %vm489_vm3, %v488_v47, 0  ;;  %v2690_v3 = vadd.s32 1, %v2134_v53 }
 0x100   : > { %v2684_v58 = vshrl.u32 %v490_v56, 5  ;;  %v492_v59 = vand.u32 31, %v490_v56 }
 0x101   : > { %v597_v62 = vsub.s32 32, %v596_v55  ;;  %v599_v0 = vshll.u32 %v2489_v63, %v596_v55  ;;  %v602_v2 = vshll.u32 %v2490_v1, %v596_v55  ;;  %v605_v5 = vshll.u32 %v2491_v4, %v596_v55 }
 0x102   : > { %v608_v7 = vshll.u32 %v2492_v6, %v596_v55  ;;  %v611_v9 = vshll.u32 %v2493_v8, %v596_v55  ;;  %vm614_vm4 = vcmp.lt.s32.totalorder %v595_v54, 1  ;;  %vm615_vm5 = vcmp.lt.s32.totalorder %v595_v54, 2 }
 0x103   : > { %v600_v10 = vshrl.u32 %v2490_v1, %v597_v62  ;;  %v603_v11 = vshrl.u32 %v2491_v4, %v597_v62  ;;  %v606_v12 = vshrl.u32 %v2492_v6, %v597_v62  ;;  %v598_v13 = vshrl.u32 %v2489_v63, %v597_v62 }
 0x104   : > { %v609_v14 = vshrl.u32 %v2493_v8, %v597_v62  ;;  %v612_v16 = vshrl.u32 %v2494_v15, %v597_v62  ;;  %vm616_vm6 = vcmp.lt.s32.totalorder %v595_v54, 3  ;;  %v493_v20 = vsub.s32 32, %v492_v59 }
 0x105   : > { %v601_v17 = vor.u32 %v600_v10, %v599_v0  ;;  %v604_v18 = vor.u32 %v603_v11, %v602_v2  ;;  %v607_v19 = vor.u32 %v606_v12, %v605_v5  ;;  %vm617_vm7 = vcmp.lt.s32.totalorder %v595_v54, 4 }
 0x106   : > { %v610_v21 = vor.u32 %v609_v14, %v608_v7  ;;  %v613_v22 = vor.u32 %v612_v16, %v611_v9  ;;  %v495_v23 = vshll.u32 %v2489_v63, %v492_v59  ;;  %v498_v36 = vshll.u32 %v2490_v1, %v492_v59 }
 0x107   : > { %v618_v25 = vsel %vm614_vm4, %v598_v13, %v601_v17  ;;  %v619_v28 = vsel %vm617_vm7, %v607_v19, 2102212464  ;;  %v622_v29 = vsel %vm614_vm4, %v601_v17, %v604_v18  ;;  %v626_v31 = vsel %vm614_vm4, %v604_v18, %v607_v19 }
 0x108   : > { %v620_v32 = vsel %vm616_vm6, %v604_v18, %v619_v28  ;;  %v623_v33 = vsel %vm617_vm7, %v610_v21, 920167782  ;;  %v627_v34 = vsel %vm617_vm7, %v613_v22, 1326507024  ;;  %v494_v39 = vshrl.u32 %v2489_v63, %v493_v20 }
 0x109   : > { %v624_v37 = vsel %vm616_vm6, %v607_v19, %v623_v33  ;;  %v628_v38 = vsel %vm616_vm6, %v610_v21, %v627_v34  ;;  %v496_v42 = vshrl.u32 %v2490_v1, %v493_v20  ;;  %v621_v43 = vsel %vm615_vm5, %v618_v25, %v620_v32 }
 0x10a   : > { %v625_v44 = vsel %vm615_vm5, %v622_v29, %v624_v37  ;;  %v629_v45 = vsel %vm615_vm5, %v626_v31, %v628_v38  ;;  %v499_v46 = vshrl.u32 %v2491_v4, %v493_v20  ;;  %v501_v62 = vshll.u32 %v2491_v4, %v492_v59 }
 0x10b   : > { %v2716_v47 = vmul.u32.u64.low %v2680_v52, %v629_v45  ;;  %v2717_v48 = vmul.u32.u64.high %v2680_v52, %v629_v45, %v2716_v47  ;;  %v2720_v51 = vmul.u32.u64.low %v2680_v52, %v625_v44  ;;  %v2721_v53 = vmul.u32.u64.high %v2680_v52, %v625_v44, %v2720_v51 }
 0x10c   : > { %v497_v55 = vor.u32 %v496_v42, %v495_v23  ;;  %v500_v56 = vor.u32 %v499_v46, %v498_v36  ;;  %v502_v0 = vshrl.u32 %v2492_v6, %v493_v20  ;;  %v637_v54 = vmul.u32 %v2680_v52, %v621_v43 }
 0x10d   : > { %v504_v2 = vshll.u32 %v2492_v6, %v492_v59  ;;  %v505_v5 = vshrl.u32 %v2493_v8, %v493_v20  ;;  %v508_v7 = vshrl.u32 %v2494_v15, %v493_v20  ;;  %v507_v10 = vshll.u32 %v2493_v8, %v492_v59 }
 0x10e   : > { %v503_v9 = vor.u32 %v502_v0, %v501_v62  ;;  %vm510_vm8 = vcmp.lt.s32.totalorder %v2684_v58, 1  ;;  %vm511_vm9 = vcmp.lt.s32.totalorder %v2684_v58, 2  ;;  %vm639_vm10 = vc.u32 %v2717_v48, %v2720_v51 }
 0x10f   : > { %v640_v11 = vadd.s32 1, %v2721_v53  ;;  %v506_v12 = vor.u32 %v505_v5, %v504_v2  ;;  %vm512_vm11 = vcmp.lt.s32.totalorder %v2684_v58, 3  ;;  %v509_v52 = vor.u32 %v508_v7, %v507_v10 }
 0x110   : > { %vm513_vm12 = vcmp.lt.s32.totalorder %v2684_v58, 4  ;;  %v514_v13 = vsel %vm510_vm8, %v494_v39, %v497_v55  ;;  %v518_v14 = vsel %vm510_vm8, %v497_v55, %v500_v56  ;;  %v522_v18 = vsel %vm510_vm8, %v500_v56, %v503_v9  ;;  %v337_v39 = vld [vmem:[%s3606_s3] sm:$0xff] }
 0x111   : > { %v641_v16 = vsel %vm639_vm10, %v640_v11, %v2721_v53  ;;  %v515_v59 = vsel %vm513_vm12, %v503_v9, 2102212464  ;;  %v519_v17 = vsel %vm513_vm12, %v506_v12, 920167782  ;;  %v523_v22 = vsel %vm513_vm12, %v509_v52, 1326507024  ;;  %2224 = vmatprep.mubr.msk.f32.mxu1 %vm914_vm14, %v337_v39 }
 0x112   : > { %v642_v19 = vadd.s32 %v641_v16, %v637_v54  ;;  %v516_v20 = vsel %vm512_vm11, %v500_v56, %v515_v59  ;;  %v520_v21 = vsel %vm512_vm11, %v503_v9, %v519_v17  ;;  %v524_v28 = vsel %vm512_vm11, %v506_v12, %v523_v22 }
 0x113   : > { %v517_v23 = vsel %vm511_vm9, %v514_v13, %v516_v20  ;;  %v521_v25 = vsel %vm511_vm9, %v518_v14, %v520_v21  ;;  %vm801_vm13 = vcmp.gt.s32.totalorder %v2690_v3, 0  ;;  %v525_v31 = vsel %vm511_vm9, %v522_v18, %v524_v28 }
 0x114   : > { %v643_v29 = vadd.s32 536870912, %v642_v19  ;;  %v2747_v32 = vmul.u32.u64.low %v2682_v57, %v521_v25  ;;  %v2748_v33 = vmul.u32.u64.high %v2682_v57, %v521_v25, %v2747_v32  ;;  %v802_v37 = vsel %vm801_vm13, %v2690_v3, 0 }
 0x115   : > { %v2752_v34 = vmul.u32.u64.low %v2682_v57, %v525_v31  ;;  %v2753_v36 = vmul.u32.u64.high %v2682_v57, %v525_v31, %v2752_v34  ;;  %v690_v38 = vshrl.u32 %v689_v61, 23  ;;  %v804_v42 = vand.u32 31, %v802_v37 }
 0x116   : > { %v2761_v58 = vshrl.u32 %v643_v29, 30  ;;  %v533_v43 = vmul.u32 %v2682_v57, %v517_v23  ;;  %v2766_v44 = vshll.u32 %v798_v60, 8  ;;  %v2770_v45 = vand.u32 8388607, %v686_v50 }
 0x117   : > { %v536_v3 = vadd.s32 1, %v2748_v33  ;;  %v803_v46 = vshrl.u32 %v802_v37, 5  ;;  %v805_v47 = vsub.s32 32, %v804_v42  ;;  %vm535_vm15 = vc.u32 %v2753_v36, %v2747_v32 }
 0x118   : > { %v645_v61 = vshll.u32 %v2761_v58, 30  ;;  %v807_v49 = vshll.u32 %v2489_v63, %v804_v42  ;;  %v810_v57 = vshll.u32 %v2490_v1, %v804_v42  ;;  %v2130_v60 = vadd.s32 4294967169, %v690_v38 }
 0x119   : > { %v537_v55 = vsel %vm535_vm15, %v536_v3, %v2748_v33  ;;  %v808_v56 = vshrl.u32 %v2490_v1, %v805_v47  ;;  %v813_v62 = vshll.u32 %v2491_v4, %v804_v42  ;;  %v811_v54 = vshrl.u32 %v2491_v4, %v805_v47 }
 0x11a   : > { %v2779_v53 = vsub.s32 %v642_v19, %v645_v61  ;;  %v538_v0 = vadd.s32 %v537_v55, %v533_v43  ;;  %v814_v2 = vshrl.u32 %v2492_v6, %v805_v47  ;;  %v816_v5 = vshll.u32 %v2492_v6, %v804_v42 }
 0x11b   : > { %v809_v9 = vor.u32 %v808_v56, %v807_v49  ;;  %v817_v10 = vshrl.u32 %v2493_v8, %v805_v47  ;;  %v819_v11 = vshll.u32 %v2493_v8, %v804_v42  ;;  %v812_v52 = vor.u32 %v811_v54, %v810_v57 }
 0x11c   : > { %v648_v7 = vsub.s32 0, %v2779_v53  ;;  %v539_v12 = vadd.s32 536870912, %v538_v0  ;;  %v815_v13 = vor.u32 %v814_v2, %v813_v62  ;;  %v820_v14 = vshrl.u32 %v2494_v15, %v805_v47 }
 0x11d   : > { %v806_v59 = vshrl.u32 %v2489_v63, %v805_v47  ;;  %v818_v17 = vor.u32 %v817_v10, %v816_v5  ;;  %vm822_vm0 = vcmp.lt.s32.totalorder %v803_v46, 1  ;;  %vm824_vm1 = vcmp.lt.s32.totalorder %v803_v46, 3 }
 0x11e   : > { %v2127_v16 = vmin.u32 %v648_v7, %v2779_v53  ;;  %v540_v18 = vshrl.u32 %v539_v12, 30  ;;  %v821_v19 = vor.u32 %v820_v14, %v819_v11  ;;  %vm825_vm2 = vcmp.lt.s32.totalorder %v803_v46, 4 }
 0x11f   : > { %v826_v21 = vsel %vm822_vm0, %v806_v59, %v809_v9  ;;  %v827_v22 = vsel %vm825_vm2, %v815_v13, 2102212464  ;;  %v830_v23 = vsel %vm822_vm0, %v809_v9, %v812_v52  ;;  %v831_v29 = vsel %vm825_vm2, %v818_v17, 920167782 }
 0x120   : > { %v650_v20 = vclz %v2127_v16  ;;  %v541_v25 = vshll.u32 %v540_v18, 30  ;;  %v828_v28 = vsel %vm824_vm1, %v812_v52, %v827_v22  ;;  %v834_v31 = vsel %vm822_vm0, %v812_v52, %v815_v13 }
 0x121   : > { %vm823_vm3 = vcmp.lt.s32.totalorder %v803_v46, 2  ;;  %v832_v34 = vsel %vm824_vm1, %v815_v13, %v831_v29  ;;  %v835_v37 = vsel %vm825_vm2, %v821_v19, 1326507024  ;;  %v638_v62 = vadd.s32 %v2720_v51, %v2717_v48 }
 0x122   : > { %v2128_v33 = vadd.s32 4294967294, %v650_v20  ;;  %v2795_v38 = vsub.s32 %v538_v0, %v541_v25  ;;  %v829_v39 = vsel %vm823_vm3, %v826_v21, %v828_v28  ;;  %v833_v42 = vsel %vm823_vm3, %v830_v23, %v832_v34 }
 0x123   : > { %v836_v43 = vsel %vm824_vm1, %v818_v17, %v835_v37  ;;  %v2799_v3 = vmul.u32.u64.low %v2766_v44, %v833_v42  ;;  %v2800_v47 = vmul.u32.u64.high %v2766_v44, %v833_v42, %v2799_v3  ;;  %v696_v54 = vadd.s32 1, %v2130_v60 }
 0x124   : > { %vm2129_vm4 = vcmp.lt.s32.totalorder %v2128_v33, 0  ;;  %v837_v61 = vsel %vm823_vm3, %v834_v31, %v836_v43  ;;  %v544_v57 = vsub.s32 0, %v2795_v38  ;;  %v845_v7 = vmul.u32 %v2766_v44, %v829_v39 }
 0x125   : > { %v653_v49 = vsel %vm2129_vm4, 0, %v2128_v33  ;;  %v2805_v55 = vmul.u32.u64.low %v2766_v44, %v837_v61  ;;  %v2806_v56 = vmul.u32.u64.high %v2766_v44, %v837_v61, %v2805_v55  ;;  %v694_v9 = vor.u32 8388608, %v2770_v45 }
 0x126   : > { %v654_v0 = vsub.s32 32, %v653_v49  ;;  %v658_v46 = vsub.s32 4294967266, %v653_v49  ;;  %v655_v2 = vshll.u32 %v2779_v53, %v653_v49  ;;  %v2123_v5 = vmin.u32 %v544_v57, %v2795_v38 }
 0x127   : > { %v848_v12 = vadd.s32 1, %v2800_v47  ;;  %vm697_vm5 = vcmp.gt.s32.totalorder %v696_v54, 0  ;;  %vm847_vm6 = vc.u32 %v2806_v56, %v2799_v3  ;;  %v564_v51 = vsub.s32 4, %v540_v18 }
 0x128   : > { %v656_v10 = vshrl.u32 %v638_v62, %v654_v0  ;;  %v659_v11 = vadd.s32 127, %v658_v46  ;;  %v546_v52 = vclz %v2123_v5  ;;  %v698_v48 = vsel %vm697_vm5, %v696_v54, 0 }
 0x129   : > { %vm480_vm7 = vcmp.lt.s32.totalorder %v2659_v26, 0  ;;  %v849_v53 = vsel %vm847_vm6, %v848_v12, %v2800_v47  ;;  %v534_v44 = vadd.s32 %v2747_v32, %v2753_v36  ;;  %v700_v16 = vand.u32 31, %v698_v48 }
 0x12a   : > { %v657_v60 = vor.u32 %v656_v10, %v655_v2  ;;  %v660_v13 = vshll.u32 %v659_v11, 23  ;;  %v2124_v45 = vadd.s32 4294967294, %v546_v52  ;;  %v850_v14 = vadd.s32 %v849_v53, %v845_v7 }
 0x12b   : > { %v2821_v17 = vshrl.u32 %v698_v48, 5  ;;  %v2823_v19 = vshll.u32 %v694_v9, 8  ;;  %v668_v20 = vsub.s32 4, %v2761_v58  ;;  %v701_v22 = vsub.s32 32, %v700_v16 }
 0x12c   : > { %v661_v59 = vor.u32 4788187, %v660_v13  ;;  %vm2125_vm8 = vcmp.lt.s32.totalorder %v2124_v45, 0  ;;  %v851_v21 = vadd.s32 536870912, %v850_v14  ;;  %v2828_v23 = vsel %vm480_vm7, %v564_v51, %v540_v18 }
 0x12d   : > { %v664_v28 = vcvt.s32.f32 %v657_v60  ;;  %v549_v32 = vsel %vm2125_vm8, 0, %v2124_v45  ;;  %v703_v36 = vshll.u32 %v2489_v63, %v700_v16  ;;  %v706_v34 = vshll.u32 %v2490_v1, %v700_v16 }
 0x12e   : > { %v662_v25 = vand.u32 2147483647, %v661_v59  ;;  %v550_v29 = vsub.s32 32, %v549_v32  ;;  %v554_v31 = vsub.s32 4294967266, %v549_v32  ;;  %v2831_v33 = vshrl.u32 %v851_v21, 30 }
 0x12f   : > { %v551_v39 = vshll.u32 %v2795_v38, %v549_v32  ;;  %v704_v42 = vshrl.u32 %v2490_v1, %v701_v22  ;;  %v707_v43 = vshrl.u32 %v2491_v4, %v701_v22  ;;  %vm584_vm9 = vcmp.lt.s32.totalorder %v2657_v24, 0 }
 0x130   : > { %v665_v37 = vmul.f32 %v664_v28, %v662_v25  ;;  %v552_v18 = vshrl.u32 %v534_v44, %v550_v29  ;;  %v555_v61 = vadd.s32 127, %v554_v31  ;;  %v853_v47 = vshll.u32 %v2831_v33, 30 }
 0x131   : > { %v710_v49 = vshrl.u32 %v2492_v6, %v701_v22  ;;  %v705_v57 = vor.u32 %v704_v42, %v703_v36  ;;  %v708_v55 = vor.u32 %v707_v43, %v706_v34  ;;  %v709_v62 = vshll.u32 %v2491_v4, %v700_v16 }
 0x132   : > { %vm718_vm10 = vcmp.lt.s32.totalorder %v2821_v17, 1  ;;  %v553_v0 = vor.u32 %v552_v18, %v551_v39  ;;  %v556_v38 = vshll.u32 %v555_v61, 23  ;;  %v2842_v46 = vsub.s32 %v850_v14, %v853_v47 }
 0x133   : > { %v712_v54 = vshll.u32 %v2492_v6, %v700_v16  ;;  %v711_v2 = vor.u32 %v710_v49, %v709_v62  ;;  %v713_v5 = vshrl.u32 %v2493_v8, %v701_v22  ;;  %v715_v7 = vshll.u32 %v2493_v8, %v700_v16 }
 0x134   : > { %v716_v9 = vshrl.u32 %v2494_v15, %v701_v22  ;;  %v666_v10 = vxor.u32 2147483648, %v665_v37  ;;  %v557_v11 = vor.u32 4788187, %v556_v38  ;;  %v856_v12 = vsub.s32 0, %v2842_v46 }
 0x135   : > { %v702_v52 = vshrl.u32 %v2489_v63, %v701_v22  ;;  %v560_v48 = vcvt.s32.f32 %v553_v0  ;;  %v714_v51 = vor.u32 %v713_v5, %v712_v54  ;;  %vm720_vm11 = vcmp.lt.s32.totalorder %v2821_v17, 3 }
 0x136   : > { %v717_v60 = vor.u32 %v716_v9, %v715_v7  ;;  %v558_v13 = vand.u32 2147483647, %v557_v11  ;;  %v2135_v53 = vmin.u32 %v856_v12, %v2842_v46  ;;  %vm721_vm12 = vcmp.lt.s32.totalorder %v2821_v17, 4 }
 0x137   : > { %v726_v44 = vsel %vm718_vm10, %v705_v57, %v708_v55  ;;  %v723_v45 = vsel %vm721_vm12, %v711_v2, 2102212464  ;;  %v727_v14 = vsel %vm721_vm12, %v714_v51, 920167782  ;;  %v730_v16 = vsel %vm718_vm10, %v708_v55, %v711_v2 }
 0x138   : > { %v731_v59 = vsel %vm721_vm12, %v717_v60, 1326507024  ;;  %v561_v21 = vmul.f32 %v560_v48, %v558_v13  ;;  %v858_v22 = vclz %v2135_v53  ;;  %vm719_vm13 = vcmp.lt.s32.totalorder %v2821_v17, 2 }
 0x139   : > { %v728_v25 = vsel %vm720_vm11, %v711_v2, %v727_v14  ;;  %v667_v28 = vsel %vm584_vm9, %v666_v10, %v665_v37  ;;  %v722_v32 = vsel %vm718_vm10, %v702_v52, %v705_v57  ;;  %v732_v29 = vsel %vm720_vm11, %v714_v51, %v731_v59 }
 0x13a   : > { %v729_v36 = vsel %vm719_vm13, %v726_v44, %v728_v25  ;;  %v562_v31 = vxor.u32 2147483648, %v561_v21  ;;  %v2136_v34 = vadd.s32 4294967294, %v858_v22  ;;  %v724_v39 = vsel %vm720_vm11, %v708_v55, %v723_v45 }
 0x13b   : > { %v733_v42 = vsel %vm719_vm13, %v730_v16, %v732_v29  ;;  %v2877_v18 = vmul.u32.u64.low %v2823_v19, %v729_v36  ;;  %v2878_v61 = vmul.u32.u64.high %v2823_v19, %v729_v36, %v2877_v18  ;;  %vm2885_vm0 = vcmp.le.f32.partialorder %v478_v30, 0.7853982 }
 0x13c   : > { %v2873_v43 = vmul.u32.u64.low %v2823_v19, %v733_v42  ;;  %v2874_v37 = vmul.u32.u64.high %v2823_v19, %v733_v42, %v2873_v43  ;;  %v563_v47 = vsel %vm480_vm7, %v562_v31, %v561_v21  ;;  %vm2137_vm15 = vcmp.lt.s32.totalorder %v2136_v34, 0 }
 0x13d   : > { %v861_v57 = vsel %vm2137_vm15, 0, %v2136_v34  ;;  %v725_v55 = vsel %vm719_vm13, %v722_v32, %v724_v39  ;;  %v566_v62 = vsel %vm2885_vm0, %v2659_v26, %v563_v47  ;;  %vm2896_vm1 = vcmp.le.f32.partialorder %v582_v27, 0.7853982 }
 0x13e   : > { %v866_v38 = vsub.s32 4294967266, %v861_v57  ;;  %v567_v30 = vsel %vm2885_vm0, 0, %v2828_v23  ;;  %2376 = vcosq.f32 %v566_v62  ;;  %v670_v17 = vsel %vm2896_vm1, %v2657_v24, %v667_v28 }
 0x13f   : > { %vm743_vm2 = vc.u32 %v2874_v37, %v2877_v18  ;;  %v744_v54 = vadd.s32 1, %v2878_v61  ;;  %2378 = vsinq.f32 %v566_v62  ;;  %v669_v27 = vsel %vm584_vm9, %v668_v20, %v2761_v58 }
 0x140   : > { %v862_v2 = vsub.s32 32, %v861_v57  ;;  %v867_v5 = vadd.s32 127, %v866_v38  ;;  %v741_v23 = vmul.u32 %v2823_v19, %v725_v55  ;;  %v846_v7 = vadd.s32 %v2799_v3, %v2806_v56 }
 0x141   : > { %v745_v9 = vsel %vm743_vm2, %v744_v54, %v2878_v61  ;;  %v571_v10 = vadd.s32 3, %v567_v30  ;;  %2380 = vcosq.f32 %v670_v17  ;;  %v671_v52 = vsel %vm2896_vm1, 0, %v669_v27 }
 0x142   : > { %v868_v11 = vshll.u32 %v867_v5, 23  ;;  %v746_v12 = vadd.s32 %v745_v9, %v741_v23  ;;  %2382 = vsinq.f32 %v670_v17  ;;  %v864_v48 = vshrl.u32 %v846_v7, %v862_v2 }
 0x143   : > { %v675_v58 = vadd.s32 3, %v671_v52  ;;  %v863_v20 = vshll.u32 %v2842_v46, %v861_v57  ;;  %v572_v13 = vand.u32 3, %v571_v10  ;;  %vm570_vm6 = vweird.f32 %v2659_v26 }
 0x144   : > { %v747_v51 = vadd.s32 536870912, %v746_v12  ;;  %v869_v60 = vor.u32 4788187, %v868_v11  ;;  %vm674_vm10 = vweird.f32 %v2657_v24  ;;  %vm792_vm12 = vcmp.lt.s32.totalorder %v2667_v35, 0 }
 0x145   : > { %v865_v56 = vor.u32 %v864_v48, %v863_v20  ;;  %v676_v14 = vand.u32 3, %v675_v58  ;;  %vm577_vm3 = vcmp.eq.s32.totalorder %v572_v13, 2  ;;  %vm573_vm4 = vcmp.lt.s32.totalorder %v572_v13, 2 }
 0x146   : > { %v2921_v19 = vshrl.u32 %v747_v51, 30  ;;  %v870_v16 = vand.u32 2147483647, %v869_v60  ;;  %vm574_vm5 = vcmp.eq.s32.totalorder %v572_v13, 0  ;;  %v742_v17 = vadd.s32 %v2877_v18, %v2874_v37 }
 0x147   : > { %v872_v28 = vcvt.s32.f32 %v865_v56  ;;  %vm681_vm7 = vcmp.eq.s32.totalorder %v676_v14, 2  ;;  %vm678_vm8 = vcmp.eq.s32.totalorder %v676_v14, 0  ;;  %vm677_vm9 = vcmp.lt.s32.totalorder %v676_v14, 2 }
 0x148   : > { %v2377_v3 = vpop.eup %2376  ;;  %v749_v53 = vshll.u32 %v2921_v19, 30  ;;  %vm2933_vm13 = vcmp.le.f32.partialorder %v790_v40, 0.7853982  ;;  %v876_v11 = vsub.s32 4, %v2831_v33  ;;  %v772_v48 = vsub.s32 4, %v2921_v19 }
 0x149   : > { %v2379_v44 = vpop.eup %2378  ;;  %v578_v45 = vxor.u32 2147483648, %v2377_v3  ;;  %v873_v39 = vmul.f32 %v872_v28, %v870_v16  ;;  %vm688_vm15 = vcmp.lt.s32.totalorder %v2672_v41, 0  ;;  %vm687_vm0 = vcmp.le.f32.partialorder %v686_v50, 0.7853982 }
 0x14a   : > { %v750_v59 = vsub.s32 %v746_v12, %v749_v53  ;;  %v575_v21 = vxor.u32 2147483648, %v2379_v44  ;;  %v877_v40 = vsel %vm792_vm12, %v876_v11, %v2831_v33  ;;  %v773_v60 = vsel %vm688_vm15, %v772_v48, %v2921_v19 }
 0x14b   : > { %v2381_v22 = vpop.eup %2380  ;;  %v579_v25 = vsel %vm577_vm3, %v578_v45, %v2379_v44  ;;  %v874_v62 = vxor.u32 2147483648, %v873_v39  ;;  %v879_v58 = vsel %vm2933_vm13, 0, %v877_v40  ;;  %v775_v53 = vsel %vm687_vm0, 0, %v773_v60 }
 0x14c   : > { %v2383_v46 = vpop.eup %2382  ;;  %v752_v32 = vsub.s32 0, %v750_v59  ;;  %v576_v36 = vsel %vm574_vm5, %v2377_v3, %v575_v21  ;;  %v682_v29 = vxor.u32 2147483648, %v2381_v22  ;;  %v883_v3 = vadd.s32 3, %v879_v58 }
 0x14d   : > { %v580_v31 = vsel %vm573_vm4, %v576_v36, %v579_v25  ;;  %v679_v34 = vxor.u32 2147483648, %v2383_v46  ;;  %v875_v30 = vsel %vm792_vm12, %v874_v62, %v873_v39  ;;  %v779_v45 = vadd.s32 3, %v775_v53 }
 0x14e   : > { %v2131_v42 = vmin.u32 %v752_v32, %v750_v59  ;;  %v683_v43 = vsel %vm681_vm7, %v682_v29, %v2383_v46  ;;  %v581_v61 = vsel %vm570_vm6, nan, %v580_v31  ;;  %v878_v7 = vsel %vm2933_vm13, %v2667_v35, %v875_v30 }
 0x14f   : > { %v680_v47 = vsel %vm678_vm8, %v2381_v22, %v679_v34  ;;  %2384 = vcosq.f32 %v878_v7  ;;  %v884_v44 = vand.u32 3, %v883_v3  ;;  %vm882_vm6 = vweird.f32 %v2667_v35  ;;  %v340_v35 = vld [vmem:[%s3606_s3 + $0x18] sm:$0xff] }
 0x150   : > { %v754_v49 = vclz %v2131_v42  ;;  %v684_v57 = vsel %vm677_vm9, %v680_v47, %v683_v43  ;;  %2386 = vsinq.f32 %v878_v7  ;;  %vm778_vm8 = vweird.f32 %v2672_v41  ;;  %v338_v42 = vld [vmem:[%s3606_s3 + $0x8] sm:$0xff]  ;;  %v339_v43 = vld [vmem:[%s3606_s3 + $0x10] sm:$0xff]  ;;  %v897_v47 = vpop.permute.xlu0 %896 }
 0x151   : > { %v685_v55 = vsel %vm674_vm10, nan, %v684_v57  ;;  %vm886_vm1 = vcmp.eq.s32.totalorder %v884_v44, 0  ;;  %vm889_vm2 = vcmp.eq.s32.totalorder %v884_v44, 2  ;;  %vm885_vm3 = vcmp.lt.s32.totalorder %v884_v44, 2 }
 0x152   : > { %v2132_v0 = vadd.s32 4294967294, %v754_v49  ;;  %v2255_v38 = vpack.c.bf16 %v685_v55, %v581_v61 }
 0x154   : > { %vm2133_vm11 = vcmp.lt.s32.totalorder %v2132_v0, 0  ;;  %2256 = vmatprep.subr.bf16.mxu1 %v2255_v38  ;;  %v907_v7 = vpop.permute.xlu0 %906 }
 0x155   : > { %v757_v26 = vsel %vm2133_vm11, 0, %v2132_v0  ;;  %2258 = vmatpush3.bf16.msra.mxu1 %v2255_v38 }
 0x156   : > { %v758_v54 = vsub.s32 32, %v757_v26  ;;  %v762_v27 = vsub.s32 4294967266, %v757_v26  ;;  %v759_v2 = vshll.u32 %v750_v59, %v757_v26  ;;  %v780_v59 = vand.u32 3, %v779_v45 }
 0x158   : > { %v760_v5 = vshrl.u32 %v742_v17, %v758_v54  ;;  %v763_v23 = vadd.s32 127, %v762_v27  ;;  %vm785_vm4 = vcmp.eq.s32.totalorder %v780_v59, 2  ;;  %vm782_vm5 = vcmp.eq.s32.totalorder %v780_v59, 0 }
 0x159   : > { %v2385_v56 = vpop.eup %2384  ;;  %vm781_vm7 = vcmp.lt.s32.totalorder %v780_v59, 2 }
 0x15a   : > { %v761_v9 = vor.u32 %v760_v5, %v759_v2  ;;  %v764_v10 = vshll.u32 %v763_v23, 23  ;;  %v2387_v33 = vpop.eup %2386  ;;  %v890_v16 = vxor.u32 2147483648, %v2385_v56 }
 0x15b   : > { %v887_v14 = vxor.u32 2147483648, %v2387_v33 }
 0x15c   : > { %v765_v37 = vor.u32 4788187, %v764_v10  ;;  %v768_v12 = vcvt.s32.f32 %v761_v9  ;;  %v891_v50 = vsel %vm889_vm2, %v890_v16, %v2387_v33 }
 0x15d   : > { %v888_v21 = vsel %vm886_vm1, %v2385_v56, %v887_v14 }
 0x15e   : > { %v766_v18 = vand.u32 2147483647, %v765_v37  ;;  %v892_v46 = vsel %vm885_vm3, %v888_v21, %v891_v50 }
 0x15f   : > { %v893_v29 = vsel %vm882_vm6, nan, %v892_v46 }
 0x160   : > { %v769_v52 = vmul.f32 %v768_v12, %v766_v18 }
 0x162   : > { %v770_v51 = vxor.u32 2147483648, %v769_v52 }
 0x164   : > { %v771_v20 = vsel %vm688_vm15, %v770_v51, %v769_v52 }
 0x165   : > { %v774_v13 = vsel %vm687_vm0, %v2672_v41, %v771_v20  ;;  %v902_v41 = vpop.permute.xlu1 %901  ;;  %v345_v20 = vld [vmem:[%s3608_s5] sm:$0xff] }
 0x166   : > { %2388 = vcosq.f32 %v774_v13  ;;  %2238 = vmatprep.mubr.msk.f32.mxu0 %vm914_vm14, %v345_v20 }
 0x167   : > { %2390 = vsinq.f32 %v774_v13 }
 0x169   : > { %v912_v38 = vpop.permute.xlu1 %911 }
 0x170   : > { %v2389_v22 = vpop.eup %2388 }
 0x171   : > { %v2391_v19 = vpop.eup %2390  ;;  %v786_v25 = vxor.u32 2147483648, %v2389_v22 }
 0x172   : > { %v783_v28 = vxor.u32 2147483648, %v2391_v19 }
 0x173   : > { %v787_v32 = vsel %vm785_vm4, %v786_v25, %v2391_v19 }
 0x174   : > { %v784_v36 = vsel %vm782_vm5, %v2389_v22, %v783_v28 }
 0x175   : > { %v788_v31 = vsel %vm781_vm7, %v784_v36, %v787_v32 }
 0x176   : > { %v789_v34 = vsel %vm778_vm8, nan, %v788_v31 }
 0x177   : > { %v2259_v39 = vpack.c.bf16 %v893_v29, %v789_v34 }
 0x179   : > { %2260 = vmatprep.subr.bf16.mxu1 %v2259_v39 }
 0x17a   : > { %2262 = vmatpush3.bf16.msra.mxu1 %v2259_v39 }
 0x17d   : > { %2225 = vmatmul.mubr.msk.f32.vlgmr.msra.gmra.mrb[0].mxu1 %vm914_vm14, %v338_v42 }
 0x17e   : > { %2227 = vmatprep.mubr.msk.f32.mxu1 %vm914_vm14, %v339_v43 }
 0x181   : > { %2228 = vmatmul.mubr.msk.f32.gmra.mrb[2].mxu1 %vm914_vm14, %v340_v35 }
 0x250   : > { %v2226_v61 = vpop.f32.mrb[0].mxu1 }
 0x251   : > { %v2966_v49 = vadd.f32 %v2226_v61, %v902_v41  ;;  %v993_v57 = vpop.f32.mrb[1].mxu1 }
 0x252   : > { %v2968_v55 = vadd.f32 %v993_v57, %v897_v47 }
 0x253   : > { %v1116_v62 = vand.u32 2147483647, %v2966_v49  ;;  %v1119_v0 = vand.u32 2139095040, %v2966_v49 }
 0x254   : > { %v1012_v26 = vand.u32 2147483647, %v2968_v55  ;;  %v1015_v30 = vand.u32 2139095040, %v2968_v55  ;;  %v2229_v17 = vpop.f32.mrb[2].mxu1 }
 0x255   : > { %v1120_v54 = vshrl.u32 %v1119_v0, 23  ;;  %v1123_v27 = vand.u32 8388607, %v1116_v62  ;;  %v2976_v24 = vadd.f32 %v2229_v17, %v912_v38  ;;  %v1003_v2 = vpop.f32.mrb[3].mxu1 }
 0x256   : > { %v1016_v5 = vshrl.u32 %v1015_v30, 23  ;;  %v1019_v23 = vand.u32 8388607, %v1012_v26  ;;  %v2982_v18 = vadd.f32 %v1003_v2, %v907_v7 }
 0x257   : > { %v2146_v9 = vadd.s32 4294967169, %v1120_v54  ;;  %v1324_v10 = vand.u32 2147483647, %v2976_v24  ;;  %v1327_v37 = vand.u32 2139095040, %v2976_v24  ;;  %v1124_v12 = vor.u32 8388608, %v1123_v27 }
 0x258   : > { %v2142_v11 = vadd.s32 4294967169, %v1016_v5  ;;  %v1020_v52 = vor.u32 8388608, %v1019_v23  ;;  %v1220_v3 = vand.u32 2147483647, %v2982_v18 }
 0x259   : > { %v1126_v40 = vadd.s32 1, %v2146_v9  ;;  %v1328_v51 = vshrl.u32 %v1327_v37, 23  ;;  %v2986_v58 = vand.u32 8388607, %v1324_v10  ;;  %v2993_v53 = vshll.u32 %v1124_v12, 8 }
 0x25a   : > { %v1022_v48 = vadd.s32 1, %v2142_v11  ;;  %v2997_v16 = vshll.u32 %v1020_v52, 8 }
 0x25b   : > { %vm1127_vm9 = vcmp.gt.s32.totalorder %v1126_v40, 0  ;;  %v2154_v13 = vadd.s32 4294967169, %v1328_v51  ;;  %v1332_v59 = vor.u32 8388608, %v2986_v58 }
 0x25c   : > { %v1128_v60 = vsel %vm1127_vm9, %v1126_v40, 0  ;;  %vm1023_vm10 = vcmp.gt.s32.totalorder %v1022_v48, 0 }
 0x25d   : > { %v1129_v56 = vshrl.u32 %v1128_v60, 5  ;;  %v1130_v33 = vand.u32 31, %v1128_v60  ;;  %v1024_v44 = vsel %vm1023_vm10, %v1022_v48, 0  ;;  %v3002_v19 = vadd.s32 1, %v2154_v13 }
 0x25e   : > { %v2995_v45 = vshrl.u32 %v1024_v44, 5  ;;  %v1026_v14 = vand.u32 31, %v1024_v44 }
 0x25f   : > { %v1131_v21 = vsub.s32 32, %v1130_v33  ;;  %v1133_v50 = vshll.u32 %v2489_v63, %v1130_v33  ;;  %v1136_v22 = vshll.u32 %v2490_v1, %v1130_v33  ;;  %v1139_v25 = vshll.u32 %v2491_v4, %v1130_v33 }
 0x260   : > { %v1142_v46 = vshll.u32 %v2492_v6, %v1130_v33  ;;  %v1145_v28 = vshll.u32 %v2493_v8, %v1130_v33  ;;  %vm1148_vm11 = vcmp.lt.s32.totalorder %v1129_v56, 1  ;;  %vm1149_vm12 = vcmp.lt.s32.totalorder %v1129_v56, 2 }
 0x261   : > { %v1134_v32 = vshrl.u32 %v2490_v1, %v1131_v21  ;;  %v1137_v36 = vshrl.u32 %v2491_v4, %v1131_v21  ;;  %v1140_v29 = vshrl.u32 %v2492_v6, %v1131_v21  ;;  %v1132_v31 = vshrl.u32 %v2489_v63, %v1131_v21 }
 0x262   : > { %v1143_v34 = vshrl.u32 %v2493_v8, %v1131_v21  ;;  %v1146_v39 = vshrl.u32 %v2494_v15, %v1131_v21  ;;  %vm1150_vm13 = vcmp.lt.s32.totalorder %v1129_v56, 3  ;;  %v1027_v41 = vsub.s32 32, %v1026_v14 }
 0x263   : > { %v1135_v42 = vor.u32 %v1134_v32, %v1133_v50  ;;  %v1138_v43 = vor.u32 %v1137_v36, %v1136_v22  ;;  %v1141_v35 = vor.u32 %v1140_v29, %v1139_v25  ;;  %vm1151_vm15 = vcmp.lt.s32.totalorder %v1129_v56, 4 }
 0x264   : > { %v1144_v61 = vor.u32 %v1143_v34, %v1142_v46  ;;  %v1147_v47 = vor.u32 %v1146_v39, %v1145_v28  ;;  %v1029_v57 = vshll.u32 %v2489_v63, %v1026_v14  ;;  %v1032_v5 = vshll.u32 %v2490_v1, %v1026_v14 }
 0x265   : > { %v1152_v0 = vsel %vm1148_vm11, %v1132_v31, %v1135_v42  ;;  %v1153_v38 = vsel %vm1151_vm15, %v1141_v35, 2102212464  ;;  %v1156_v30 = vsel %vm1148_vm11, %v1135_v42, %v1138_v43  ;;  %v1160_v17 = vsel %vm1148_vm11, %v1138_v43, %v1141_v35 }
 0x266   : > { %v1154_v54 = vsel %vm1150_vm13, %v1138_v43, %v1153_v38  ;;  %v1157_v27 = vsel %vm1151_vm15, %v1144_v61, 920167782  ;;  %v1161_v2 = vsel %vm1151_vm15, %v1147_v47, 1326507024  ;;  %v1028_v9 = vshrl.u32 %v2489_v63, %v1027_v41 }
 0x267   : > { %v1158_v23 = vsel %vm1150_vm13, %v1141_v35, %v1157_v27  ;;  %v1162_v7 = vsel %vm1150_vm13, %v1144_v61, %v1161_v2  ;;  %v1030_v11 = vshrl.u32 %v2490_v1, %v1027_v41  ;;  %v1155_v37 = vsel %vm1149_vm12, %v1152_v0, %v1154_v54 }
 0x268   : > { %v1159_v12 = vsel %vm1149_vm12, %v1156_v30, %v1158_v23  ;;  %v1163_v40 = vsel %vm1149_vm12, %v1160_v17, %v1162_v7  ;;  %v1033_v52 = vshrl.u32 %v2491_v4, %v1027_v41  ;;  %v1035_v44 = vshll.u32 %v2491_v4, %v1026_v14 }
 0x269   : > { %v3028_v48 = vmul.u32.u64.low %v2993_v53, %v1163_v40  ;;  %v3029_v51 = vmul.u32.u64.high %v2993_v53, %v1163_v40, %v3028_v48  ;;  %v3032_v20 = vmul.u32.u64.low %v2993_v53, %v1159_v12  ;;  %v3033_v60 = vmul.u32.u64.high %v2993_v53, %v1159_v12, %v3032_v20 }
 0x26a   : > { %v1031_v13 = vor.u32 %v1030_v11, %v1029_v57  ;;  %v1034_v33 = vor.u32 %v1033_v52, %v1032_v5  ;;  %v1036_v21 = vshrl.u32 %v2492_v6, %v1027_v41  ;;  %v1171_v50 = vmul.u32 %v2993_v53, %v1155_v37 }
 0x26b   : > { %v1038_v56 = vshll.u32 %v2492_v6, %v1026_v14  ;;  %v1039_v22 = vshrl.u32 %v2493_v8, %v1027_v41  ;;  %v1042_v25 = vshrl.u32 %v2494_v15, %v1027_v41  ;;  %v1041_v28 = vshll.u32 %v2493_v8, %v1026_v14 }
 0x26c   : > { %v1037_v46 = vor.u32 %v1036_v21, %v1035_v44  ;;  %vm1044_vm0 = vcmp.lt.s32.totalorder %v2995_v45, 1  ;;  %vm1045_vm1 = vcmp.lt.s32.totalorder %v2995_v45, 2  ;;  %vm1173_vm2 = vc.u32 %v3029_v51, %v3032_v20 }
 0x26d   : > { %v1174_v32 = vadd.s32 1, %v3033_v60  ;;  %v1040_v36 = vor.u32 %v1039_v22, %v1038_v56  ;;  %vm1046_vm3 = vcmp.lt.s32.totalorder %v2995_v45, 3  ;;  %v1043_v53 = vor.u32 %v1042_v25, %v1041_v28 }
 0x26e   : > { %vm1047_vm4 = vcmp.lt.s32.totalorder %v2995_v45, 4  ;;  %v1048_v29 = vsel %vm1044_vm0, %v1028_v9, %v1031_v13  ;;  %v1052_v31 = vsel %vm1044_vm0, %v1031_v13, %v1034_v33  ;;  %v1056_v42 = vsel %vm1044_vm0, %v1034_v33, %v1037_v46 }
 0x26f   : > { %v1175_v34 = vsel %vm1173_vm2, %v1174_v32, %v3033_v60  ;;  %v1049_v39 = vsel %vm1047_vm4, %v1037_v46, 2102212464  ;;  %v1053_v14 = vsel %vm1047_vm4, %v1040_v36, 920167782  ;;  %v1057_v61 = vsel %vm1047_vm4, %v1043_v53, 1326507024 }
 0x270   : > { %v1176_v43 = vadd.s32 %v1175_v34, %v1171_v50  ;;  %v1050_v35 = vsel %vm1046_vm3, %v1034_v33, %v1049_v39  ;;  %v1054_v41 = vsel %vm1046_vm3, %v1037_v46, %v1053_v14  ;;  %v1058_v57 = vsel %vm1046_vm3, %v1040_v36, %v1057_v61 }
 0x271   : > { %v1055_v47 = vsel %vm1045_vm1, %v1052_v31, %v1054_v41  ;;  %vm1335_vm5 = vcmp.gt.s32.totalorder %v3002_v19, 0  ;;  %v1223_v0 = vand.u32 2139095040, %v2982_v18  ;;  %v1059_v30 = vsel %vm1045_vm1, %v1056_v42, %v1058_v57 }
 0x272   : > { %v1177_v38 = vadd.s32 536870912, %v1176_v43  ;;  %v3056_v17 = vmul.u32.u64.low %v2997_v16, %v1055_v47  ;;  %v3057_v54 = vmul.u32.u64.high %v2997_v16, %v1055_v47, %v3056_v17  ;;  %v1051_v27 = vsel %vm1045_vm1, %v1048_v29, %v1050_v35 }
 0x273   : > { %v3063_v2 = vmul.u32.u64.low %v2997_v16, %v1059_v30  ;;  %v3064_v5 = vmul.u32.u64.high %v2997_v16, %v1059_v30, %v3063_v2  ;;  %v1336_v23 = vsel %vm1335_vm5, %v3002_v19, 0  ;;  %v3070_v11 = vadd.s32 %v3032_v20, %v3029_v51 }
 0x274   : > { %v3067_v7 = vshrl.u32 %v1177_v38, 30  ;;  %v1338_v9 = vand.u32 31, %v1336_v23  ;;  %v3074_v37 = vshll.u32 %v1332_v59, 8  ;;  %v1224_v12 = vshrl.u32 %v1223_v0, 23 }
 0x275   : > { %v3078_v45 = vand.u32 8388607, %v1220_v3  ;;  %v1067_v52 = vmul.u32 %v2997_v16, %v1051_v27  ;;  %v1070_v19 = vadd.s32 1, %v3057_v54  ;;  %vm1069_vm6 = vc.u32 %v3064_v5, %v3056_v17 }
 0x276   : > { %v1179_v40 = vshll.u32 %v3067_v7, 30  ;;  %v1339_v48 = vsub.s32 32, %v1338_v9  ;;  %v1337_v51 = vshrl.u32 %v1336_v23, 5  ;;  %v1341_v58 = vshll.u32 %v2489_v63, %v1338_v9 }
 0x277   : > { %v1344_v59 = vshll.u32 %v2490_v1, %v1338_v9  ;;  %v1071_v60 = vsel %vm1069_vm6, %v1070_v19, %v3057_v54  ;;  %v1347_v33 = vshll.u32 %v2491_v4, %v1338_v9  ;;  %v1350_v50 = vshll.u32 %v2492_v6, %v1338_v9 }
 0x278   : > { %v3087_v20 = vsub.s32 %v1176_v43, %v1179_v40  ;;  %v1342_v13 = vshrl.u32 %v2490_v1, %v1339_v48  ;;  %v1072_v16 = vadd.s32 %v1071_v60, %v1067_v52  ;;  %v1345_v44 = vshrl.u32 %v2491_v4, %v1339_v48 }
 0x279   : > { %v1348_v21 = vshrl.u32 %v2492_v6, %v1339_v48  ;;  %v1351_v25 = vshrl.u32 %v2493_v8, %v1339_v48  ;;  %v1353_v46 = vshll.u32 %v2493_v8, %v1338_v9  ;;  %v1354_v53 = vshrl.u32 %v2494_v15, %v1339_v48 }
 0x27a   : > { %v1182_v56 = vsub.s32 0, %v3087_v20  ;;  %v1343_v22 = vor.u32 %v1342_v13, %v1341_v58  ;;  %v1073_v28 = vadd.s32 536870912, %v1072_v16  ;;  %v1346_v32 = vor.u32 %v1345_v44, %v1344_v59 }
 0x27b   : > { %v1349_v36 = vor.u32 %v1348_v21, %v1347_v33  ;;  %v1340_v31 = vshrl.u32 %v2489_v63, %v1339_v48  ;;  %v1352_v34 = vor.u32 %v1351_v25, %v1350_v50  ;;  %v2150_v39 = vadd.s32 4294967169, %v1224_v12 }
 0x27c   : > { %v2147_v29 = vmin.u32 %v1182_v56, %v3087_v20  ;;  %v3101_v14 = vshrl.u32 %v1073_v28, 30  ;;  %v1355_v42 = vor.u32 %v1354_v53, %v1353_v46  ;;  %vm1356_vm7 = vcmp.lt.s32.totalorder %v1337_v51, 1 }
 0x27d   : > { %vm1359_vm8 = vcmp.lt.s32.totalorder %v1337_v51, 4  ;;  %vm1357_vm9 = vcmp.lt.s32.totalorder %v1337_v51, 2  ;;  %v1364_v41 = vsel %vm1356_vm7, %v1343_v22, %v1346_v32  ;;  %vm1358_vm10 = vcmp.lt.s32.totalorder %v1337_v51, 3 }
 0x27e   : > { %v1184_v43 = vclz %v2147_v29  ;;  %v1361_v35 = vsel %vm1359_vm8, %v1349_v36, 2102212464  ;;  %v1075_v61 = vshll.u32 %v3101_v14, 30  ;;  %v1365_v47 = vsel %vm1359_vm8, %v1352_v34, 920167782 }
 0x27f   : > { %v1368_v57 = vsel %vm1356_vm7, %v1346_v32, %v1349_v36  ;;  %v1360_v38 = vsel %vm1356_vm7, %v1340_v31, %v1343_v22  ;;  %v1366_v30 = vsel %vm1358_vm10, %v1349_v36, %v1365_v47  ;;  %v1369_v54 = vsel %vm1359_vm8, %v1355_v42, 1326507024 }
 0x280   : > { %v2148_v0 = vadd.s32 4294967294, %v1184_v43  ;;  %v3104_v27 = vsub.s32 %v1072_v16, %v1075_v61  ;;  %v1362_v2 = vsel %vm1358_vm10, %v1346_v32, %v1361_v35  ;;  %v1367_v23 = vsel %vm1357_vm9, %v1364_v41, %v1366_v30 }
 0x281   : > { %v1370_v9 = vsel %vm1358_vm10, %v1352_v34, %v1369_v54  ;;  %v3109_v40 = vmul.u32.u64.low %v3074_v37, %v1367_v23  ;;  %v3110_v52 = vmul.u32.u64.high %v3074_v37, %v1367_v23, %v3109_v40  ;;  %v1363_v33 = vsel %vm1357_vm9, %v1360_v38, %v1362_v2 }
 0x282   : > { %vm2149_vm11 = vcmp.lt.s32.totalorder %v2148_v0, 0  ;;  %v1371_v12 = vsel %vm1357_vm9, %v1368_v57, %v1370_v9  ;;  %v1078_v48 = vsub.s32 0, %v3104_v27  ;;  %v1230_v16 = vadd.s32 1, %v2150_v39 }
 0x283   : > { %v1187_v19 = vsel %vm2149_vm11, 0, %v2148_v0  ;;  %v3115_v58 = vmul.u32.u64.low %v3074_v37, %v1371_v12  ;;  %v3116_v59 = vmul.u32.u64.high %v3074_v37, %v1371_v12, %v3115_v58  ;;  %v1228_v50 = vor.u32 8388608, %v3078_v45 }
 0x284   : > { %v1188_v60 = vsub.s32 32, %v1187_v19  ;;  %v1192_v13 = vsub.s32 4294967266, %v1187_v19  ;;  %v1189_v44 = vshll.u32 %v3087_v20, %v1187_v19  ;;  %v2143_v21 = vmin.u32 %v1078_v48, %v3104_v27 }
 0x285   : > { %v1382_v25 = vadd.s32 1, %v3110_v52  ;;  %vm1231_vm12 = vcmp.gt.s32.totalorder %v1230_v16, 0  ;;  %v1379_v28 = vmul.u32 %v3074_v37, %v1363_v33  ;;  %vm1381_vm13 = vc.u32 %v3116_v59, %v3109_v40 }
 0x286   : > { %v1190_v56 = vshrl.u32 %v3070_v11, %v1188_v60  ;;  %v1193_v22 = vadd.s32 127, %v1192_v13  ;;  %v1080_v46 = vclz %v2143_v21  ;;  %v1232_v51 = vsel %vm1231_vm12, %v1230_v16, 0 }
 0x287   : > { %v1068_v20 = vadd.s32 %v3056_v17, %v3064_v5  ;;  %v1383_v45 = vsel %vm1381_vm13, %v1382_v25, %v3110_v52  ;;  %vm1118_vm15 = vcmp.lt.s32.totalorder %v2966_v49, 0  ;;  %v3131_v29 = vshrl.u32 %v1232_v51, 5 }
 0x288   : > { %v1191_v32 = vor.u32 %v1190_v56, %v1189_v44  ;;  %v1194_v36 = vshll.u32 %v1193_v22, 23  ;;  %v2144_v11 = vadd.s32 4294967294, %v1080_v46  ;;  %v1384_v53 = vadd.s32 %v1383_v45, %v1379_v28 }
 0x289   : > { %v1234_v31 = vand.u32 31, %v1232_v51  ;;  %vm3135_vm0 = vcmp.le.f32.partialorder %v1116_v62, 0.7853982  ;;  %v3139_v39 = vshll.u32 %v1228_v50, 8  ;;  %v1098_v17 = vsub.s32 4, %v3101_v14 }
 0x28a   : > { %v1195_v34 = vor.u32 4788187, %v1194_v36  ;;  %v1202_v5 = vsub.s32 4, %v3067_v7  ;;  %v1198_v42 = vcvt.s32.f32 %v1191_v32  ;;  %vm2145_vm1 = vcmp.lt.s32.totalorder %v2144_v11, 0 }
 0x28b   : > { %v1385_v43 = vadd.s32 536870912, %v1384_v53  ;;  %v1235_v35 = vsub.s32 32, %v1234_v31  ;;  %v1083_v61 = vsel %vm2145_vm1, 0, %v2144_v11  ;;  %v1237_v47 = vshll.u32 %v2489_v63, %v1234_v31 }
 0x28c   : > { %v1196_v41 = vand.u32 2147483647, %v1195_v34  ;;  %v1240_v62 = vshll.u32 %v2490_v1, %v1234_v31  ;;  %v1084_v57 = vsub.s32 32, %v1083_v61  ;;  %v1088_v0 = vsub.s32 4294967266, %v1083_v61 }
 0x28d   : > { %v3145_v38 = vshrl.u32 %v1385_v43, 30  ;;  %v1243_v30 = vshll.u32 %v2491_v4, %v1234_v31  ;;  %vm1252_vm2 = vcmp.lt.s32.totalorder %v3131_v29, 1  ;;  %v1085_v2 = vshll.u32 %v3104_v27, %v1083_v61 }
 0x28e   : > { %v1199_v54 = vmul.f32 %v1198_v42, %v1196_v41  ;;  %v1238_v23 = vshrl.u32 %v2490_v1, %v1235_v35  ;;  %v1241_v9 = vshrl.u32 %v2491_v4, %v1235_v35  ;;  %v1086_v12 = vshrl.u32 %v1068_v20, %v1084_v57 }
 0x28f   : > { %v1089_v52 = vadd.s32 127, %v1088_v0  ;;  %v1387_v19 = vshll.u32 %v3145_v38, 30  ;;  %v1244_v48 = vshrl.u32 %v2492_v6, %v1235_v35  ;;  %v1246_v33 = vshll.u32 %v2492_v6, %v1234_v31 }
 0x290   : > { %v1200_v58 = vxor.u32 2147483648, %v1199_v54  ;;  %v1239_v60 = vor.u32 %v1238_v23, %v1237_v47  ;;  %v1242_v13 = vor.u32 %v1241_v9, %v1240_v62  ;;  %vm1014_vm3 = vcmp.lt.s32.totalorder %v2968_v55, 0 }
 0x291   : > { %v1087_v16 = vor.u32 %v1086_v12, %v1085_v2  ;;  %v1090_v44 = vshll.u32 %v1089_v52, 23  ;;  %v3156_v27 = vsub.s32 %v1384_v53, %v1387_v19  ;;  %v1245_v21 = vor.u32 %v1244_v48, %v1243_v30 }
 0x292   : > { %v1201_v50 = vsel %vm1118_vm15, %v1200_v58, %v1199_v54  ;;  %v1247_v56 = vshrl.u32 %v2493_v8, %v1235_v35  ;;  %v1249_v22 = vshll.u32 %v2493_v8, %v1234_v31  ;;  %v1250_v25 = vshrl.u32 %v2494_v15, %v1235_v35 }
 0x293   : > { %v1204_v46 = vsel %vm3135_vm0, %v2966_v49, %v1201_v50  ;;  %vm3168_vm4 = vcmp.le.f32.partialorder %v1012_v26, 0.7853982  ;;  %v1091_v51 = vor.u32 4788187, %v1090_v44  ;;  %v1390_v32 = vsub.s32 0, %v3156_v27 }
 0x294   : > { %v1236_v36 = vshrl.u32 %v2489_v63, %v1235_v35  ;;  %2392 = vcosq.f32 %v1204_v46  ;;  %v1094_v20 = vcvt.s32.f32 %v1087_v16  ;;  %v1248_v45 = vor.u32 %v1247_v56, %v1246_v33 }
 0x295   : > { %v1251_v11 = vor.u32 %v1250_v25, %v1249_v22  ;;  %2394 = vsinq.f32 %v1204_v46  ;;  %v1092_v53 = vand.u32 2147483647, %v1091_v51  ;;  %v2155_v31 = vmin.u32 %v1390_v32, %v3156_v27 }
 0x296   : > { %vm1255_vm5 = vcmp.lt.s32.totalorder %v3131_v29, 4  ;;  %vm1254_vm6 = vcmp.lt.s32.totalorder %v3131_v29, 3  ;;  %v1260_v34 = vsel %vm1252_vm2, %v1239_v60, %v1242_v13  ;;  %vm1253_vm7 = vcmp.lt.s32.totalorder %v3131_v29, 2 }
 0x297   : > { %v1257_v26 = vsel %vm1255_vm5, %v1245_v21, 2102212464  ;;  %v1261_v42 = vsel %vm1255_vm5, %v1248_v45, 920167782  ;;  %v1095_v43 = vmul.f32 %v1094_v20, %v1092_v53  ;;  %v1392_v41 = vclz %v2155_v31 }
 0x298   : > { %v1262_v35 = vsel %vm1254_vm6, %v1245_v21, %v1261_v42  ;;  %v1256_v61 = vsel %vm1252_vm2, %v1236_v36, %v1239_v60  ;;  %v1264_v62 = vsel %vm1252_vm2, %v1242_v13, %v1245_v21  ;;  %v1265_v57 = vsel %vm1255_vm5, %v1251_v11, 1326507024 }
 0x299   : > { %v1263_v47 = vsel %vm1253_vm7, %v1260_v34, %v1262_v35  ;;  %v1096_v0 = vxor.u32 2147483648, %v1095_v43  ;;  %v2156_v30 = vadd.s32 4294967294, %v1392_v41  ;;  %v1258_v54 = vsel %vm1254_vm6, %v1242_v13, %v1257_v26 }
 0x29a   : > { %v1266_v2 = vsel %vm1254_vm6, %v1248_v45, %v1265_v57  ;;  %v3189_v9 = vmul.u32.u64.low %v3139_v39, %v1263_v47  ;;  %v3190_v12 = vmul.u32.u64.high %v3139_v39, %v1263_v47, %v3189_v9  ;;  %v1099_v52 = vsel %vm1014_vm3, %v1098_v17, %v3101_v14 }
 0x29b   : > { %v1267_v23 = vsel %vm1253_vm7, %v1264_v62, %v1266_v2  ;;  %v1097_v19 = vsel %vm1014_vm3, %v1096_v0, %v1095_v43  ;;  %vm2157_vm8 = vcmp.lt.s32.totalorder %v2156_v30, 0  ;;  %v1259_v33 = vsel %vm1253_vm7, %v1256_v61, %v1258_v54 }
 0x29c   : > { %v3201_v48 = vmul.u32.u64.low %v3139_v39, %v1267_v23  ;;  %v3202_v58 = vmul.u32.u64.high %v3139_v39, %v1267_v23, %v3201_v48  ;;  %v1100_v60 = vsel %vm3168_vm4, %v2968_v55, %v1097_v19  ;;  %v1395_v13 = vsel %vm2157_vm8, 0, %v2156_v30 }
 0x29d   : > { %v1203_v14 = vsel %vm1118_vm15, %v1202_v5, %v3067_v7  ;;  %2396 = vcosq.f32 %v1100_v60  ;;  %v1400_v17 = vsub.s32 4294967266, %v1395_v13  ;;  %v1101_v16 = vsel %vm3168_vm4, 0, %v1099_v52 }
 0x29e   : > { %v2393_v44 = vpop.eup %2392  ;;  %2398 = vsinq.f32 %v1100_v60  ;;  %v1278_v21 = vadd.s32 1, %v3190_v12  ;;  %v1205_v50 = vsel %vm3135_vm0, 0, %v1203_v14  ;;  %v1396_v56 = vsub.s32 32, %v1395_v13 }
 0x29f   : > { %v2395_v29 = vpop.eup %2394  ;;  %v1401_v22 = vadd.s32 127, %v1400_v17  ;;  %v1275_v25 = vmul.u32 %v3139_v39, %v1259_v33  ;;  %vm1277_vm9 = vc.u32 %v3202_v58, %v3189_v9  ;;  %v1105_v5 = vadd.s32 3, %v1101_v16 }
 0x2a0   : > { %v1279_v7 = vsel %vm1277_vm9, %v1278_v21, %v3190_v12  ;;  %v1380_v46 = vadd.s32 %v3109_v40, %v3116_v59  ;;  %v1209_v32 = vadd.s32 3, %v1205_v50  ;;  %v1213_v36 = vxor.u32 2147483648, %v2395_v29 }
 0x2a1   : > { %v1402_v28 = vshll.u32 %v1401_v22, 23  ;;  %v1280_v51 = vadd.s32 %v1279_v7, %v1275_v25  ;;  %v1216_v11 = vxor.u32 2147483648, %v2393_v44  ;;  %v1106_v53 = vand.u32 3, %v1105_v5 }
 0x2a2   : > { %v1398_v37 = vshrl.u32 %v1380_v46, %v1396_v56  ;;  %v1210_v45 = vand.u32 3, %v1209_v32  ;;  %v1397_v39 = vshll.u32 %v3156_v27, %v1395_v13  ;;  %vm1208_vm15 = vweird.f32 %v2966_v49 }
 0x2a3   : > { %v1281_v20 = vadd.s32 536870912, %v1280_v51  ;;  %v1403_v31 = vor.u32 4788187, %v1402_v28  ;;  %vm1111_vm13 = vcmp.eq.s32.totalorder %v1106_v53, 2  ;;  %vm1108_vm0 = vcmp.eq.s32.totalorder %v1106_v53, 0 }
 0x2a4   : > { %vm1212_vm10 = vcmp.eq.s32.totalorder %v1210_v45, 0  ;;  %vm1215_vm11 = vcmp.eq.s32.totalorder %v1210_v45, 2  ;;  %v1399_v43 = vor.u32 %v1398_v37, %v1397_v39  ;;  %vm1211_vm12 = vcmp.lt.s32.totalorder %v1210_v45, 2 }
 0x2a5   : > { %v3226_v26 = vshrl.u32 %v1281_v20, 30  ;;  %v1214_v34 = vsel %vm1212_vm10, %v2393_v44, %v1213_v36  ;;  %v1217_v59 = vsel %vm1215_vm11, %v1216_v11, %v2395_v29  ;;  %v1404_v47 = vand.u32 2147483647, %v1403_v31 }
 0x2a6   : > { %v1218_v61 = vsel %vm1211_vm12, %v1214_v34, %v1217_v59  ;;  %v1406_v30 = vcvt.s32.f32 %v1399_v43  ;;  %vm1107_vm1 = vcmp.lt.s32.totalorder %v1106_v53, 2  ;;  %vm1104_vm2 = vweird.f32 %v2968_v55 }
 0x2a7   : > { %v2397_v42 = vpop.eup %2396  ;;  %v1283_v40 = vshll.u32 %v3226_v26, 30  ;;  %v1219_v57 = vsel %vm1208_vm15, nan, %v1218_v61  ;;  %vm1326_vm4 = vcmp.lt.s32.totalorder %v2976_v24, 0  ;;  %v1276_v55 = vadd.s32 %v3189_v9, %v3202_v58 }
 0x2a8   : > { %v2399_v41 = vpop.eup %2398  ;;  %v1112_v35 = vxor.u32 2147483648, %v2397_v42  ;;  %v1407_v12 = vmul.f32 %v1406_v30, %v1404_v47  ;;  %vm3238_vm5 = vcmp.le.f32.partialorder %v1324_v10, 0.7853982  ;;  %v1410_v7 = vsub.s32 4, %v3145_v38 }
 0x2a9   : > { %v1284_v27 = vsub.s32 %v1280_v51, %v1283_v40  ;;  %v1109_v62 = vxor.u32 2147483648, %v2399_v41  ;;  %v1306_v28 = vsub.s32 4, %v3226_v26  ;;  %vm1222_vm6 = vcmp.lt.s32.totalorder %v2982_v18, 0 }
 0x2aa   : > { %v1113_v0 = vsel %vm1111_vm13, %v1112_v35, %v2399_v41  ;;  %v1408_v49 = vxor.u32 2147483648, %v1407_v12  ;;  %v1411_v10 = vsel %vm1326_vm4, %v1410_v7, %v3145_v38  ;;  %vm1221_vm7 = vcmp.le.f32.partialorder %v1220_v3, 0.7853982 }
 0x2ab   : > { %v1286_v54 = vsub.s32 0, %v1284_v27  ;;  %v1110_v2 = vsel %vm1108_vm0, %v2397_v42, %v1109_v62  ;;  %v1413_v32 = vsel %vm3238_vm5, 0, %v1411_v10  ;;  %v1307_v37 = vsel %vm1222_vm6, %v1306_v28, %v3226_v26 }
 0x2ac   : > { %v1114_v23 = vsel %vm1107_vm1, %v1110_v2, %v1113_v0  ;;  %v1409_v14 = vsel %vm1326_vm4, %v1408_v49, %v1407_v12  ;;  %v1417_v45 = vadd.s32 3, %v1413_v32  ;;  %v1309_v53 = vsel %vm1221_vm7, 0, %v1307_v37  ;;  %v347_v2 = vld [vmem:[%s3608_s5 + $0x10] sm:$0xff] }
 0x2ad   : > { %v2151_v52 = vmin.u32 %v1286_v54, %v1284_v27  ;;  %v1115_v19 = vsel %vm1104_vm2, nan, %v1114_v23  ;;  %v1412_v56 = vsel %vm3238_vm5, %v2976_v24, %v1409_v14  ;;  %v1313_v31 = vadd.s32 3, %v1309_v53  ;;  %v346_v54 = vld [vmem:[%s3608_s5 + $0x8] sm:$0xff]  ;;  %v1436_v23 = vpop.permute.xlu1 %1435 }
 0x2ae   : > { %v2263_v48 = vpack.c.bf16 %v1219_v57, %v1115_v19  ;;  %2400 = vcosq.f32 %v1412_v56  ;;  %v1418_v39 = vand.u32 3, %v1417_v45  ;;  %vm1416_vm13 = vweird.f32 %v2976_v24  ;;  %v348_v24 = vld [vmem:[%s3608_s5 + $0x18] sm:$0xff] }
 0x2af   : > { %v1288_v60 = vclz %v2151_v52  ;;  %2402 = vsinq.f32 %v1412_v56  ;;  %v1314_v43 = vand.u32 3, %v1313_v31  ;;  %vm1312_vm0 = vweird.f32 %v2982_v18  ;;  %v1431_v52 = vpop.permute.xlu0 %1430 }
 0x2b0   : > { %2264 = vmatprep.subr.bf16.mxu0 %v2263_v48  ;;  %vm1420_vm8 = vcmp.eq.s32.totalorder %v1418_v39, 0  ;;  %vm1423_vm9 = vcmp.eq.s32.totalorder %v1418_v39, 2  ;;  %vm1419_vm10 = vcmp.lt.s32.totalorder %v1418_v39, 2 }
 0x2b1   : > { %v2152_v13 = vadd.s32 4294967294, %v1288_v60  ;;  %2266 = vmatpush3.bf16.msra.mxu0 %v2263_v48  ;;  %vm1319_vm11 = vcmp.eq.s32.totalorder %v1314_v43, 2  ;;  %vm1316_vm12 = vcmp.eq.s32.totalorder %v1314_v43, 0  ;;  %vm1315_vm15 = vcmp.lt.s32.totalorder %v1314_v43, 2 }
 0x2b3   : > { %vm2153_vm3 = vcmp.lt.s32.totalorder %v2152_v13, 0 }
 0x2b4   : > { %v1291_v33 = vsel %vm2153_vm3, 0, %v2152_v13 }
 0x2b5   : > { %v1292_v17 = vsub.s32 32, %v1291_v33  ;;  %v1296_v16 = vsub.s32 4294967266, %v1291_v33  ;;  %v1293_v21 = vshll.u32 %v1284_v27, %v1291_v33  ;;  %v1446_v33 = vpop.permute.xlu1 %1445 }
 0x2b7   : > { %v1294_v50 = vshrl.u32 %v1276_v55, %v1292_v17  ;;  %v1297_v29 = vadd.s32 127, %v1296_v16 }
 0x2b8   : > { %v2401_v11 = vpop.eup %2400 }
 0x2b9   : > { %v1295_v22 = vor.u32 %v1294_v50, %v1293_v21  ;;  %v1298_v25 = vshll.u32 %v1297_v29, 23  ;;  %v2403_v38 = vpop.eup %2402  ;;  %v1424_v42 = vxor.u32 2147483648, %v2401_v11 }
 0x2ba   : > { %v1421_v34 = vxor.u32 2147483648, %v2403_v38 }
 0x2bb   : > { %v1299_v9 = vor.u32 4788187, %v1298_v25  ;;  %v1302_v5 = vcvt.s32.f32 %v1295_v22  ;;  %v1425_v3 = vsel %vm1423_vm9, %v1424_v42, %v2403_v38  ;;  %v1441_v25 = vpop.permute.xlu0 %1440 }
 0x2bc   : > { %v1422_v40 = vsel %vm1420_vm8, %v2401_v11, %v1421_v34 }
 0x2bd   : > { %v1300_v58 = vand.u32 2147483647, %v1299_v9  ;;  %v1426_v35 = vsel %vm1419_vm10, %v1422_v40, %v1425_v3 }
 0x2be   : > { %v1427_v62 = vsel %vm1416_vm13, nan, %v1426_v35 }
 0x2bf   : > { %v1303_v46 = vmul.f32 %v1302_v5, %v1300_v58 }
 0x2c1   : > { %v1304_v51 = vxor.u32 2147483648, %v1303_v46 }
 0x2c3   : > { %v1305_v36 = vsel %vm1222_vm6, %v1304_v51, %v1303_v46 }
 0x2c4   : > { %v1308_v20 = vsel %vm1221_vm7, %v2982_v18, %v1305_v36  ;;  %v2495_v18 = vmov 0.0|0.0  }
 0x2c5   : > { %2404 = vcosq.f32 %v1308_v20  ;;  %2271 = vmatprep.subr.bf16.mxu1 %v2495_v18 }
 0x2c6   : > { %2406 = vsinq.f32 %v1308_v20 }
 0x2cf   : > { %v2405_v59 = vpop.eup %2404 }
 0x2d0   : > { %v2407_v26 = vpop.eup %2406  ;;  %v1320_v41 = vxor.u32 2147483648, %v2405_v59 }
 0x2d1   : > { %v1317_v61 = vxor.u32 2147483648, %v2407_v26 }
 0x2d2   : > { %v1321_v47 = vsel %vm1319_vm11, %v1320_v41, %v2407_v26 }
 0x2d3   : > { %v1318_v27 = vsel %vm1316_vm12, %v2405_v59, %v1317_v61 }
 0x2d4   : > { %v1322_v57 = vsel %vm1315_vm15, %v1318_v27, %v1321_v47 }
 0x2d5   : > { %v1323_v0 = vsel %vm1312_vm0, nan, %v1322_v57 }
 0x2d6   : > { %v2267_v30 = vpack.c.bf16 %v1427_v62, %v1323_v0 }
 0x2d8   : > { %2268 = vmatprep.subr.bf16.mxu0 %v2267_v30 }
 0x2d9   : > { %2270 = vmatpush3.bf16.msra.mxu0 %v2267_v30 }
 0x2dc   : > { %2239 = vmatmul.mubr.msk.f32.vlgmr.msra.gmra.mrb[4].mxu0 %vm914_vm14, %v346_v54 }
 0x2dd   : > { %2241 = vmatprep.mubr.msk.f32.mxu0 %vm914_vm14, %v347_v2 }
 0x2e0   : > { %2242 = vmatmul.mubr.msk.f32.gmra.mrb[6].mxu0 %vm914_vm14, %v348_v24 }
 0x3af   : > { %v2240_v12 = vpop.f32.mrb[4].mxu0 }
 0x3b0   : > { %v3272_v19 = vadd.f32 %v2240_v12, %v1436_v23  ;;  %v1526_v48 = vpop.f32.mrb[5].mxu0 }
 0x3b1   : > { %v3274_v60 = vadd.f32 %v1526_v48, %v1431_v52 }
 0x3b2   : > { %v1649_v49 = vand.u32 2147483647, %v3272_v19  ;;  %v1652_v13 = vand.u32 2139095040, %v3272_v19  ;;  %vm1651_vm15 = vcmp.lt.s32.totalorder %v3272_v19, 0 }
 0x3b3   : > { %v1545_v14 = vand.u32 2147483647, %v3274_v60  ;;  %v1548_v55 = vand.u32 2139095040, %v3274_v60  ;;  %v2243_v17 = vpop.f32.mrb[6].mxu0 }
 0x3b4   : > { %v1653_v16 = vshrl.u32 %v1652_v13, 23  ;;  %v1656_v44 = vand.u32 8388607, %v1649_v49  ;;  %v3282_v21 = vadd.f32 %v2243_v17, %v1446_v33  ;;  %v1536_v50 = vpop.f32.mrb[7].mxu0 }
 0x3b5   : > { %v1549_v29 = vshrl.u32 %v1548_v55, 23  ;;  %v1552_v56 = vand.u32 8388607, %v1545_v14  ;;  %v3287_v10 = vadd.f32 %v1536_v50, %v1441_v25 }
 0x3b6   : > { %v2166_v22 = vadd.s32 4294967169, %v1653_v16  ;;  %v1860_v9 = vand.u32 2139095040, %v3282_v21  ;;  %v1657_v58 = vor.u32 8388608, %v1656_v44  ;;  %v1857_v51 = vand.u32 2147483647, %v3282_v21 }
 0x3b7   : > { %v2162_v7 = vadd.s32 4294967169, %v1549_v29  ;;  %v1553_v46 = vor.u32 8388608, %v1552_v56  ;;  %v1753_v38 = vand.u32 2147483647, %v3287_v10 }
 0x3b8   : > { %v1659_v5 = vadd.s32 1, %v2166_v22  ;;  %v1861_v32 = vshrl.u32 %v1860_v9, 23  ;;  %v3291_v53 = vshll.u32 %v1657_v58, 8  ;;  %v3299_v34 = vand.u32 8388607, %v1857_v51 }
 0x3b9   : > { %v1555_v28 = vadd.s32 1, %v2162_v7  ;;  %v3295_v31 = vshll.u32 %v1553_v46, 8 }
 0x3ba   : > { %vm1660_vm1 = vcmp.gt.s32.totalorder %v1659_v5, 0  ;;  %v2174_v37 = vadd.s32 4294967169, %v1861_v32 }
 0x3bb   : > { %v1661_v36 = vsel %vm1660_vm1, %v1659_v5, 0  ;;  %vm1556_vm2 = vcmp.gt.s32.totalorder %v1555_v28, 0 }
 0x3bc   : > { %v1662_v20 = vshrl.u32 %v1661_v36, 5  ;;  %v1663_v45 = vand.u32 31, %v1661_v36  ;;  %v1557_v11 = vsel %vm1556_vm2, %v1555_v28, 0  ;;  %v3302_v3 = vadd.s32 1, %v2174_v37 }
 0x3bd   : > { %v3293_v39 = vshrl.u32 %v1557_v11, 5  ;;  %v1559_v40 = vand.u32 31, %v1557_v11 }
 0x3be   : > { %v1664_v42 = vsub.s32 32, %v1663_v45  ;;  %v1666_v43 = vshll.u32 %v2489_v63, %v1663_v45  ;;  %v1669_v59 = vshll.u32 %v2490_v1, %v1663_v45  ;;  %v1672_v26 = vshll.u32 %v2491_v4, %v1663_v45 }
 0x3bf   : > { %v1675_v41 = vshll.u32 %v2492_v6, %v1663_v45  ;;  %v1678_v35 = vshll.u32 %v2493_v8, %v1663_v45  ;;  %vm1681_vm3 = vcmp.lt.s32.totalorder %v1662_v20, 1  ;;  %vm1682_vm4 = vcmp.lt.s32.totalorder %v1662_v20, 2 }
 0x3c0   : > { %v1667_v61 = vshrl.u32 %v2490_v1, %v1664_v42  ;;  %v1670_v47 = vshrl.u32 %v2491_v4, %v1664_v42  ;;  %v1673_v27 = vshrl.u32 %v2492_v6, %v1664_v42  ;;  %v1665_v62 = vshrl.u32 %v2489_v63, %v1664_v42 }
 0x3c1   : > { %v1676_v57 = vshrl.u32 %v2493_v8, %v1664_v42  ;;  %v1679_v0 = vshrl.u32 %v2494_v15, %v1664_v42  ;;  %v1560_v24 = vsub.s32 32, %v1559_v40  ;;  %vm1683_vm5 = vcmp.lt.s32.totalorder %v1662_v20, 3 }
 0x3c2   : > { %v1668_v30 = vor.u32 %v1667_v61, %v1666_v43  ;;  %v1671_v54 = vor.u32 %v1670_v47, %v1669_v59  ;;  %v1674_v2 = vor.u32 %v1673_v27, %v1672_v26  ;;  %vm1684_vm6 = vcmp.lt.s32.totalorder %v1662_v20, 4 }
 0x3c3   : > { %v1677_v23 = vor.u32 %v1676_v57, %v1675_v41  ;;  %v1680_v12 = vor.u32 %v1679_v0, %v1678_v35  ;;  %v1562_v44 = vshll.u32 %v2489_v63, %v1559_v40  ;;  %v1563_v56 = vshrl.u32 %v2490_v1, %v1560_v24 }
 0x3c4   : > { %v1685_v52 = vsel %vm1681_vm3, %v1665_v62, %v1668_v30  ;;  %v1686_v48 = vsel %vm1684_vm6, %v1674_v2, 2102212464  ;;  %v1689_v13 = vsel %vm1681_vm3, %v1668_v30, %v1671_v54  ;;  %v1693_v33 = vsel %vm1681_vm3, %v1671_v54, %v1674_v2 }
 0x3c5   : > { %v1687_v55 = vsel %vm1683_vm5, %v1671_v54, %v1686_v48  ;;  %v1690_v17 = vsel %vm1684_vm6, %v1677_v23, 920167782  ;;  %v1694_v16 = vsel %vm1684_vm6, %v1680_v12, 1326507024  ;;  %v1565_v22 = vshll.u32 %v2490_v1, %v1559_v40 }
 0x3c6   : > { %v1691_v50 = vsel %vm1683_vm5, %v1674_v2, %v1690_v17  ;;  %v1695_v29 = vsel %vm1683_vm5, %v1677_v23, %v1694_v16  ;;  %v1688_v25 = vsel %vm1682_vm4, %v1685_v52, %v1687_v55  ;;  %v1566_v58 = vshrl.u32 %v2491_v4, %v1560_v24 }
 0x3c7   : > { %v1692_v7 = vsel %vm1682_vm4, %v1689_v13, %v1691_v50  ;;  %v1696_v9 = vsel %vm1682_vm4, %v1693_v33, %v1695_v29  ;;  %v1564_v36 = vor.u32 %v1563_v56, %v1562_v44  ;;  %v1568_v45 = vshll.u32 %v2491_v4, %v1559_v40 }
 0x3c8   : > { %v3325_v5 = vmul.u32.u64.low %v3291_v53, %v1696_v9  ;;  %v3326_v46 = vmul.u32.u64.high %v3291_v53, %v1696_v9, %v3325_v5  ;;  %v3329_v28 = vmul.u32.u64.low %v3291_v53, %v1692_v7  ;;  %v3330_v32 = vmul.u32.u64.high %v3291_v53, %v1692_v7, %v3329_v28 }
 0x3c9   : > { %v1567_v37 = vor.u32 %v1566_v58, %v1565_v22  ;;  %v1569_v11 = vshrl.u32 %v2492_v6, %v1560_v24  ;;  %v1561_v42 = vshrl.u32 %v2489_v63, %v1560_v24  ;;  %v1571_v20 = vshll.u32 %v2492_v6, %v1559_v40 }
 0x3ca   : > { %v1572_v43 = vshrl.u32 %v2493_v8, %v1560_v24  ;;  %v1575_v59 = vshrl.u32 %v2494_v15, %v1560_v24  ;;  %v1704_v26 = vmul.u32 %v3291_v53, %v1688_v25  ;;  %v1574_v35 = vshll.u32 %v2493_v8, %v1559_v40 }
 0x3cb   : > { %v1570_v41 = vor.u32 %v1569_v11, %v1568_v45  ;;  %vm1577_vm7 = vcmp.lt.s32.totalorder %v3293_v39, 1  ;;  %vm1706_vm8 = vc.u32 %v3326_v46, %v3329_v28  ;;  %v1707_v61 = vadd.s32 1, %v3330_v32 }
 0x3cc   : > { %v1573_v47 = vor.u32 %v1572_v43, %v1571_v20  ;;  %vm1578_vm9 = vcmp.lt.s32.totalorder %v3293_v39, 2  ;;  %v1576_v27 = vor.u32 %v1575_v59, %v1574_v35  ;;  %vm1579_vm10 = vcmp.lt.s32.totalorder %v3293_v39, 3 }
 0x3cd   : > { %vm1580_vm11 = vcmp.lt.s32.totalorder %v3293_v39, 4  ;;  %v1585_v62 = vsel %vm1577_vm7, %v1564_v36, %v1567_v37  ;;  %v1708_v53 = vsel %vm1706_vm8, %v1707_v61, %v3330_v32  ;;  %v1589_v40 = vsel %vm1577_vm7, %v1567_v37, %v1570_v41 }
 0x3ce   : > { %v1582_v57 = vsel %vm1580_vm11, %v1570_v41, 2102212464  ;;  %v1586_v0 = vsel %vm1580_vm11, %v1573_v47, 920167782  ;;  %v1709_v30 = vadd.s32 %v1708_v53, %v1704_v26  ;;  %v1581_v54 = vsel %vm1577_vm7, %v1561_v42, %v1564_v36 }
 0x3cf   : > { %v1587_v2 = vsel %vm1579_vm10, %v1570_v41, %v1586_v0  ;;  %v1590_v24 = vsel %vm1580_vm11, %v1576_v27, 1326507024  ;;  %v1583_v23 = vsel %vm1579_vm10, %v1567_v37, %v1582_v57  ;;  %vm1868_vm12 = vcmp.gt.s32.totalorder %v3302_v3, 0 }
 0x3d0   : > { %v1588_v12 = vsel %vm1578_vm9, %v1585_v62, %v1587_v2  ;;  %v1591_v52 = vsel %vm1579_vm10, %v1573_v47, %v1590_v24  ;;  %v1710_v48 = vadd.s32 536870912, %v1709_v30  ;;  %v1865_v44 = vor.u32 8388608, %v3299_v34 }
 0x3d1   : > { %v1592_v13 = vsel %vm1578_vm9, %v1589_v40, %v1591_v52  ;;  %v3353_v33 = vmul.u32.u64.low %v3295_v31, %v1588_v12  ;;  %v3354_v55 = vmul.u32.u64.high %v3295_v31, %v1588_v12, %v3353_v33  ;;  %v1869_v50 = vsel %vm1868_vm12, %v3302_v3, 0 }
 0x3d2   : > { %v3358_v17 = vmul.u32.u64.low %v3295_v31, %v1592_v13  ;;  %v3359_v16 = vmul.u32.u64.high %v3295_v31, %v1592_v13, %v3358_v17  ;;  %v1711_v29 = vshrl.u32 %v1710_v48, 30  ;;  %v1584_v56 = vsel %vm1578_vm9, %v1581_v54, %v1583_v23 }
 0x3d3   : > { %v1871_v22 = vand.u32 31, %v1869_v50  ;;  %v1756_v25 = vand.u32 2139095040, %v3287_v10  ;;  %v1603_v9 = vadd.s32 1, %v3354_v55  ;;  %v1600_v5 = vmul.u32 %v3295_v31, %v1584_v56 }
 0x3d4   : > { %v1712_v7 = vshll.u32 %v1711_v29, 30  ;;  %vm1602_vm13 = vc.u32 %v3359_v16, %v3353_v33  ;;  %v3372_v34 = vand.u32 8388607, %v1753_v38  ;;  %v3377_v32 = vshll.u32 %v1865_v44, 8 }
 0x3d5   : > { %v1872_v58 = vsub.s32 32, %v1871_v22  ;;  %v1604_v39 = vsel %vm1602_vm13, %v1603_v9, %v3354_v55  ;;  %v1757_v36 = vshrl.u32 %v1756_v25, 23  ;;  %v1874_v45 = vshll.u32 %v2489_v63, %v1871_v22 }
 0x3d6   : > { %v3374_v3 = vsub.s32 %v1709_v30, %v1712_v7  ;;  %v1605_v37 = vadd.s32 %v1604_v39, %v1600_v5  ;;  %v1705_v42 = vadd.s32 %v3329_v28, %v3326_v46  ;;  %v1877_v43 = vshll.u32 %v2490_v1, %v1871_v22 }
 0x3d7   : > { %v1875_v31 = vshrl.u32 %v2490_v1, %v1872_v58  ;;  %v1878_v11 = vshrl.u32 %v2491_v4, %v1872_v58  ;;  %v1881_v59 = vshrl.u32 %v2492_v6, %v1872_v58  ;;  %v1870_v41 = vshrl.u32 %v1869_v50, 5 }
 0x3d8   : > { %v1715_v20 = vsub.s32 0, %v3374_v3  ;;  %v1606_v26 = vadd.s32 536870912, %v1605_v37  ;;  %v1880_v61 = vshll.u32 %v2491_v4, %v1871_v22  ;;  %v1883_v62 = vshll.u32 %v2492_v6, %v1871_v22 }
 0x3d9   : > { %v1876_v35 = vor.u32 %v1875_v31, %v1874_v45  ;;  %v1879_v27 = vor.u32 %v1878_v11, %v1877_v43  ;;  %v1884_v53 = vshrl.u32 %v2493_v8, %v1872_v58  ;;  %v1735_v57 = vsub.s32 4, %v1711_v29 }
 0x3da   : > { %v2167_v47 = vmin.u32 %v1715_v20, %v3374_v3  ;;  %v3391_v46 = vshrl.u32 %v1606_v26, 30  ;;  %v1882_v28 = vor.u32 %v1881_v59, %v1880_v61  ;;  %v1887_v0 = vshrl.u32 %v2494_v15, %v1872_v58 }
 0x3db   : > { %v1873_v30 = vshrl.u32 %v2489_v63, %v1872_v58  ;;  %v1885_v54 = vor.u32 %v1884_v53, %v1883_v62  ;;  %v1886_v2 = vshll.u32 %v2493_v8, %v1871_v22  ;;  %vm1889_vm0 = vcmp.lt.s32.totalorder %v1870_v41, 1 }
 0x3dc   : > { %v1717_v40 = vclz %v2167_v47  ;;  %v1608_v24 = vshll.u32 %v3391_v46, 30  ;;  %vm1891_vm1 = vcmp.lt.s32.totalorder %v1870_v41, 3  ;;  %vm1892_vm2 = vcmp.lt.s32.totalorder %v1870_v41, 4 }
 0x3dd   : > { %v1888_v12 = vor.u32 %v1887_v0, %v1886_v2  ;;  %v1897_v52 = vsel %vm1889_vm0, %v1876_v35, %v1879_v27  ;;  %v1898_v48 = vsel %vm1892_vm2, %v1885_v54, 920167782  ;;  %vm1890_vm3 = vcmp.lt.s32.totalorder %v1870_v41, 2 }
 0x3de   : > { %v2168_v23 = vadd.s32 4294967294, %v1717_v40  ;;  %v3399_v13 = vsub.s32 %v1605_v37, %v1608_v24  ;;  %v1894_v55 = vsel %vm1892_vm2, %v1882_v28, 2102212464  ;;  %v1899_v17 = vsel %vm1891_vm1, %v1882_v28, %v1898_v48 }
 0x3df   : > { %v1736_v44 = vsel %vm1651_vm15, %v1735_v57, %v1711_v29  ;;  %v1900_v50 = vsel %vm1890_vm3, %v1897_v52, %v1899_v17  ;;  %v2170_v56 = vadd.s32 4294967169, %v1757_v36  ;;  %v1893_v7 = vsel %vm1889_vm0, %v1873_v30, %v1876_v35 }
 0x3e0   : > { %vm2169_vm4 = vcmp.lt.s32.totalorder %v2168_v23, 0  ;;  %v1611_v25 = vsub.s32 0, %v3399_v13  ;;  %v1901_v9 = vsel %vm1889_vm0, %v1879_v27, %v1882_v28  ;;  %v1895_v39 = vsel %vm1891_vm1, %v1879_v27, %v1894_v55 }
 0x3e1   : > { %v1720_v22 = vsel %vm2169_vm4, 0, %v2168_v23  ;;  %v1902_v37 = vsel %vm1892_vm2, %v1888_v12, 1326507024  ;;  %vm1547_vm5 = vcmp.lt.s32.totalorder %v3274_v60, 0  ;;  %v1763_v47 = vadd.s32 1, %v2170_v56 }
 0x3e2   : > { %v1721_v58 = vsub.s32 32, %v1720_v22  ;;  %v1725_v5 = vsub.s32 4294967266, %v1720_v22  ;;  %v2163_v29 = vmin.u32 %v1611_v25, %v3399_v13  ;;  %v1903_v45 = vsel %vm1891_vm1, %v1885_v54, %v1902_v37 }
 0x3e3   : > { %v3415_v36 = vmul.u32.u64.low %v3377_v32, %v1900_v50  ;;  %v3416_v31 = vmul.u32.u64.high %v3377_v32, %v1900_v50, %v3415_v36  ;;  %v1722_v11 = vshll.u32 %v3374_v3, %v1720_v22  ;;  %v1904_v59 = vsel %vm1890_vm3, %v1901_v9, %v1903_v45 }
 0x3e4   : > { %v1723_v20 = vshrl.u32 %v1705_v42, %v1721_v58  ;;  %v1726_v43 = vadd.s32 127, %v1725_v5  ;;  %v1613_v26 = vclz %v2163_v29  ;;  %vm3427_vm6 = vcmp.le.f32.partialorder %v1649_v49, 0.7853982 }
 0x3e5   : > { %v3422_v35 = vmul.u32.u64.low %v3377_v32, %v1904_v59  ;;  %v3423_v61 = vmul.u32.u64.high %v3377_v32, %v1904_v59, %v3422_v35  ;;  %v1896_v3 = vsel %vm1890_vm3, %v1893_v7, %v1895_v39  ;;  %v1915_v57 = vadd.s32 1, %v3416_v31 }
 0x3e6   : > { %v1724_v62 = vor.u32 %v1723_v20, %v1722_v11  ;;  %v1727_v53 = vshll.u32 %v1726_v43, 23  ;;  %v2164_v42 = vadd.s32 4294967294, %v1613_v26  ;;  %v1761_v28 = vor.u32 8388608, %v3372_v34 }
 0x3e7   : > { %vm1764_vm7 = vcmp.gt.s32.totalorder %v1763_v47, 0  ;;  %v1738_v40 = vsel %vm3427_vm6, 0, %v1736_v44  ;;  %v1631_v30 = vsub.s32 4, %v3391_v46  ;;  %v1912_v2 = vmul.u32 %v3377_v32, %v1896_v3 }
 0x3e8   : > { %v1728_v0 = vor.u32 4788187, %v1727_v53  ;;  %v1765_v49 = vsel %vm1764_vm7, %v1763_v47, 0  ;;  %v1731_v54 = vcvt.s32.f32 %v1724_v62  ;;  %vm2165_vm8 = vcmp.lt.s32.totalorder %v2164_v42, 0 }
 0x3e9   : > { %vm1914_vm9 = vc.u32 %v3423_v61, %v3415_v36  ;;  %v1616_v24 = vsel %vm2165_vm8, 0, %v2164_v42  ;;  %v1767_v34 = vand.u32 31, %v1765_v49  ;;  %v1601_v12 = vadd.s32 %v3353_v33, %v3359_v16 }
 0x3ea   : > { %v1729_v41 = vand.u32 2147483647, %v1728_v0  ;;  %v1916_v23 = vsel %vm1914_vm9, %v1915_v57, %v3416_v31  ;;  %v1617_v52 = vsub.s32 32, %v1616_v24  ;;  %v1621_v48 = vsub.s32 4294967266, %v1616_v24 }
 0x3eb   : > { %v1917_v55 = vadd.s32 %v1916_v23, %v1912_v2  ;;  %v3443_v44 = vadd.s32 3, %v1738_v40  ;;  %vm3447_vm10 = vcmp.le.f32.partialorder %v1545_v14, 0.7853982  ;;  %v3454_v50 = vsel %vm1547_vm5, %v1631_v30, %v3391_v46 }
 0x3ec   : > { %v1732_v17 = vmul.f32 %v1731_v54, %v1729_v41  ;;  %v1768_v56 = vsub.s32 32, %v1767_v34  ;;  %v1618_v33 = vshll.u32 %v3399_v13, %v1616_v24  ;;  %v1619_v16 = vshrl.u32 %v1601_v12, %v1617_v52 }
 0x3ed   : > { %v1622_v22 = vadd.s32 127, %v1621_v48  ;;  %v1918_v25 = vadd.s32 536870912, %v1917_v55  ;;  %v3457_v9 = vshrl.u32 %v1765_v49, 5  ;;  %v1770_v58 = vshll.u32 %v2489_v63, %v1767_v34 }
 0x3ee   : > { %v1733_v7 = vxor.u32 2147483648, %v1732_v17  ;;  %v1771_v14 = vshrl.u32 %v2490_v1, %v1768_v56  ;;  %v1620_v5 = vor.u32 %v1619_v16, %v1618_v33  ;;  %v1777_v46 = vshrl.u32 %v2492_v6, %v1768_v56 }
 0x3ef   : > { %v1623_v39 = vshll.u32 %v1622_v22, 23  ;;  %v3461_v37 = vshrl.u32 %v1918_v25, 30  ;;  %v1773_v13 = vshll.u32 %v2490_v1, %v1767_v34  ;;  %v1774_v45 = vshrl.u32 %v2491_v4, %v1768_v56 }
 0x3f0   : > { %v1734_v29 = vsel %vm1651_vm15, %v1733_v7, %v1732_v17  ;;  %v1776_v31 = vshll.u32 %v2491_v4, %v1767_v34  ;;  %v1772_v59 = vor.u32 %v1771_v14, %v1770_v58  ;;  %v1627_v26 = vcvt.s32.f32 %v1620_v5 }
 0x3f1   : > { %v1737_v11 = vsel %vm3427_vm6, %v3272_v19, %v1734_v29  ;;  %v1624_v20 = vor.u32 4788187, %v1623_v39  ;;  %v1920_v43 = vshll.u32 %v3461_v37, 30  ;;  %v1779_v35 = vshll.u32 %v2492_v6, %v1767_v34 }
 0x3f2   : > { %2408 = vcosq.f32 %v1737_v11  ;;  %v1780_v47 = vshrl.u32 %v2493_v8, %v1768_v56  ;;  %v1778_v53 = vor.u32 %v1777_v46, %v1776_v31  ;;  %v1775_v4 = vor.u32 %v1774_v45, %v1773_v13 }
 0x3f3   : > { %2410 = vsinq.f32 %v1737_v11  ;;  %v1625_v1 = vand.u32 2147483647, %v1624_v20  ;;  %v3475_v62 = vsub.s32 %v1917_v55, %v1920_v43  ;;  %v1782_v27 = vshll.u32 %v2493_v8, %v1767_v34 }
 0x3f4   : > { %v1781_v3 = vor.u32 %v1780_v47, %v1779_v35  ;;  %v1783_v42 = vshrl.u32 %v2494_v15, %v1768_v56  ;;  %v1634_v0 = vsel %vm3447_vm10, 0, %v3454_v50  ;;  %v1801_v40 = vshll.u32 %v1761_v28, 8 }
 0x3f5   : > { %v1628_v57 = vmul.f32 %v1627_v26, %v1625_v1  ;;  %v1923_v6 = vsub.s32 0, %v3475_v62  ;;  %v1769_v30 = vshrl.u32 %v2489_v63, %v1768_v56  ;;  %vm1785_vm11 = vcmp.lt.s32.totalorder %v3457_v9, 1 }
 0x3f6   : > { %v1784_v49 = vor.u32 %v1783_v42, %v1782_v27  ;;  %vm1788_vm12 = vcmp.lt.s32.totalorder %v3457_v9, 4  ;;  %vm1786_vm13 = vcmp.lt.s32.totalorder %v3457_v9, 2  ;;  %vm1787_vm15 = vcmp.lt.s32.totalorder %v3457_v9, 3 }
 0x3f7   : > { %v1629_v54 = vxor.u32 2147483648, %v1628_v57  ;;  %v2175_v8 = vmin.u32 %v1923_v6, %v3475_v62  ;;  %v1790_v15 = vsel %vm1788_vm12, %v1778_v53, 2102212464  ;;  %v1789_v2 = vsel %vm1785_vm11, %v1769_v30, %v1772_v59 }
 0x3f8   : > { %v1793_v41 = vsel %vm1785_vm11, %v1772_v59, %v1775_v4  ;;  %v1794_v63 = vsel %vm1788_vm12, %v1781_v3, 920167782  ;;  %v1797_v34 = vsel %vm1785_vm11, %v1775_v4, %v1778_v53  ;;  %v1791_v52 = vsel %vm1787_vm15, %v1775_v4, %v1790_v15 }
 0x3f9   : > { %v1630_v28 = vsel %vm1547_vm5, %v1629_v54, %v1628_v57  ;;  %v1925_v24 = vclz %v2175_v8  ;;  %v1795_v23 = vsel %vm1787_vm15, %v1778_v53, %v1794_v63  ;;  %v1798_v55 = vsel %vm1788_vm12, %v1784_v49, 1326507024 }
 0x3fa   : > { %v1633_v12 = vsel %vm3447_vm10, %v3274_v60, %v1630_v28  ;;  %v1796_v48 = vsel %vm1786_vm13, %v1793_v41, %v1795_v23  ;;  %v1799_v50 = vsel %vm1787_vm15, %v1781_v3, %v1798_v55  ;;  %v1743_v56 = vand.u32 3, %v3443_v44 }
 0x3fb   : > { %2412 = vcosq.f32 %v1633_v12  ;;  %v2176_v17 = vadd.s32 4294967294, %v1925_v24  ;;  %v1800_v16 = vsel %vm1786_vm13, %v1797_v34, %v1799_v50  ;;  %v1792_v7 = vsel %vm1786_vm13, %v1789_v2, %v1791_v52 }
 0x3fc   : > { %v2409_v33 = vpop.eup %2408  ;;  %2414 = vsinq.f32 %v1633_v12  ;;  %v3505_v22 = vmul.u32.u64.low %v1801_v40, %v1796_v48  ;;  %v3506_v32 = vmul.u32.u64.high %v1801_v40, %v1796_v48, %v3505_v22  ;;  %v1638_v5 = vadd.s32 3, %v1634_v0 }
 0x3fd   : > { %v2411_v25 = vpop.eup %2410  ;;  %vm2177_vm0 = vcmp.lt.s32.totalorder %v2176_v17, 0  ;;  %v3511_v58 = vmul.u32.u64.low %v1801_v40, %v1800_v16  ;;  %v3512_v14 = vmul.u32.u64.high %v1801_v40, %v1800_v16, %v3511_v58  ;;  %vm1741_vm1 = vweird.f32 %v3272_v19 }
 0x3fe   : > { %v1928_v39 = vsel %vm2177_vm0, 0, %v2176_v17  ;;  %v1746_v44 = vxor.u32 2147483648, %v2411_v25  ;;  %vm1745_vm2 = vcmp.eq.s32.totalorder %v1743_v56, 0  ;;  %v1808_v29 = vmul.u32 %v1801_v40, %v1792_v7 }
 0x3ff   : > { %v1933_v46 = vsub.s32 4294967266, %v1928_v39  ;;  %v1811_v13 = vadd.s32 1, %v3506_v32  ;;  %v1749_v31 = vxor.u32 2147483648, %v2409_v33  ;;  %v1929_v11 = vsub.s32 32, %v1928_v39 }
 0x400   : > { %v1747_v45 = vsel %vm1745_vm2, %v2409_v33, %v1746_v44  ;;  %vm1810_vm3 = vc.u32 %v3512_v14, %v3505_v22  ;;  %vm1748_vm4 = vcmp.eq.s32.totalorder %v1743_v56, 2  ;;  %v1639_v43 = vand.u32 3, %v1638_v5 }
 0x401   : > { %v1934_v20 = vadd.s32 127, %v1933_v46  ;;  %v1812_v9 = vsel %vm1810_vm3, %v1811_v13, %v3506_v32  ;;  %vm1744_vm5 = vcmp.lt.s32.totalorder %v1743_v56, 2  ;;  %v1750_v59 = vsel %vm1748_vm4, %v1749_v31, %v2411_v25 }
 0x402   : > { %v1913_v26 = vadd.s32 %v3415_v36, %v3423_v61  ;;  %v1813_v47 = vadd.s32 %v1812_v9, %v1808_v29  ;;  %v1751_v1 = vsel %vm1744_vm5, %v1747_v45, %v1750_v59  ;;  %vm2496_vm6 = vmmov 0  }
 0x403   : > { %v1935_v35 = vshll.u32 %v1934_v20, 23  ;;  %v1752_v53 = vsel %vm1741_vm1, nan, %v1751_v1  ;;  %v2497_v42 = vmov 0.0   ;;  %vm1644_vm7 = vcmp.eq.s32.totalorder %v1639_v43, 2 }
 0x404   : > { %v1931_v3 = vshrl.u32 %v1913_v26, %v1929_v11  ;;  %v1814_v27 = vadd.s32 536870912, %v1813_v47  ;;  %2252 = vmatprep.mubr.msk.f32.mxu1 %vm2496_vm6, %v2497_v42  ;;  %v1930_v6 = vshll.u32 %v3475_v62, %v1928_v39  ;;  %vm1641_vm8 = vcmp.eq.s32.totalorder %v1639_v43, 0 }
 0x405   : > { %v2413_v4 = vpop.eup %2412  ;;  %v1936_v40 = vor.u32 4788187, %v1935_v35  ;;  %vm1640_vm9 = vcmp.lt.s32.totalorder %v1639_v43, 2  ;;  %vm1637_vm10 = vweird.f32 %v3274_v60  ;;  %vm1859_vm12 = vcmp.lt.s32.totalorder %v3282_v21, 0 }
 0x406   : > { %v2415_v57 = vpop.eup %2414  ;;  %v1645_v0 = vxor.u32 2147483648, %v2413_v4  ;;  %v1815_v30 = vshrl.u32 %v1814_v27, 30  ;;  %v1932_v49 = vor.u32 %v1931_v3, %v1930_v6  ;;  %v1809_v55 = vadd.s32 %v3505_v22, %v3512_v14 }
 0x407   : > { %v1642_v36 = vxor.u32 2147483648, %v2415_v57  ;;  %v1937_v15 = vand.u32 2147483647, %v1936_v40  ;;  %vm3533_vm13 = vcmp.le.f32.partialorder %v1857_v51, 0.7853982  ;;  %v1943_v58 = vsub.s32 4, %v3461_v37 }
 0x408   : > { %v1646_v61 = vsel %vm1644_vm7, %v1645_v0, %v2415_v57  ;;  %v1816_v54 = vshll.u32 %v1815_v30, 30  ;;  %v1939_v28 = vcvt.s32.f32 %v1932_v49  ;;  %v1839_v44 = vsub.s32 4, %v1815_v30 }
 0x409   : > { %v1643_v19 = vsel %vm1641_vm8, %v2413_v4, %v1642_v36  ;;  %v1944_v51 = vsel %vm1859_vm12, %v1943_v58, %v3461_v37  ;;  %vm1755_vm15 = vcmp.lt.s32.totalorder %v3287_v10, 0  ;;  %vm1754_vm0 = vcmp.le.f32.partialorder %v1753_v38, 0.7853982 }
 0x40a   : > { %v1647_v8 = vsel %vm1640_vm9, %v1643_v19, %v1646_v61  ;;  %v1817_v2 = vsub.s32 %v1813_v47, %v1816_v54  ;;  %v1940_v62 = vmul.f32 %v1939_v28, %v1937_v15  ;;  %v1946_v46 = vsel %vm3533_vm13, 0, %v1944_v51  ;;  %v353_v61 = vld [vmem:[%s3610_s7] sm:$0x1]  ;;  %v1964_v19 = vpop.permute.xlu0 %1963 }
 0x40b   : > { %v1648_v41 = vsel %vm1637_vm10, nan, %v1647_v8  ;;  %v1840_v45 = vsel %vm1755_vm15, %v1839_v44, %v1815_v30  ;;  %v1950_v31 = vadd.s32 3, %v1946_v46  ;;  %vm1949_vm6 = vweird.f32 %v3282_v21 }
 0x40c   : > { %v2272_v63 = vpack.c.bf16 %v1752_v53, %v1648_v41  ;;  %v1819_v24 = vsub.s32 0, %v1817_v2  ;;  %v1941_v12 = vxor.u32 2147483648, %v1940_v62  ;;  %v1842_v37 = vsel %vm1754_vm0, 0, %v1840_v45 }
 0x40d   : > { %v1951_v43 = vand.u32 3, %v1950_v31  ;;  %v1846_v59 = vadd.s32 3, %v1842_v37  ;;  %vm1845_vm8 = vweird.f32 %v3287_v10  ;;  %v1966_v49 = vlaneseq }
 0x40e   : > { %2273 = vmatpush3.bf16.msra.mxu1 %v2272_v63  ;;  %v2171_v23 = vmin.u32 %v1819_v24, %v1817_v2  ;;  %v1942_v60 = vsel %vm1859_vm12, %v1941_v12, %v1940_v62 }
 0x40f   : > { %2274 = vmatprep.subr.bf16.mxu1 %v2495_v18  ;;  %v1945_v32 = vsel %vm3533_vm13, %v3282_v21, %v1942_v60  ;;  %vm1953_vm1 = vcmp.eq.s32.totalorder %v1951_v43, 0  ;;  %vm1956_vm2 = vcmp.eq.s32.totalorder %v1951_v43, 2  ;;  %v1847_v47 = vand.u32 3, %v1846_v59 }
 0x410   : > { %v1821_v34 = vclz %v2171_v23  ;;  %2416 = vcosq.f32 %v1945_v32  ;;  %vm1952_vm3 = vcmp.lt.s32.totalorder %v1951_v43, 2  ;;  %v1967_v54 = vshrl.u32 %v1966_v49, 7 }
 0x411   : > { %2418 = vsinq.f32 %v1945_v32  ;;  %vm1852_vm4 = vcmp.eq.s32.totalorder %v1847_v47, 2  ;;  %vm1849_vm5 = vcmp.eq.s32.totalorder %v1847_v47, 0  ;;  %vm1848_vm7 = vcmp.lt.s32.totalorder %v1847_v47, 2 }
 0x412   : > { %v2172_v52 = vadd.s32 4294967294, %v1821_v34  ;;  %v1968_v21 = vsub.s32 0, %v1967_v54 }
 0x414   : > { %vm2173_vm11 = vcmp.lt.s32.totalorder %v2172_v52, 0 }
 0x415   : > { %v1824_v48 = vsel %vm2173_vm11, 0, %v2172_v52 }
 0x416   : > { %v1825_v17 = vsub.s32 32, %v1824_v48  ;;  %v1829_v50 = vsub.s32 4294967266, %v1824_v48  ;;  %v1826_v18 = vshll.u32 %v1817_v2, %v1824_v48 }
 0x418   : > { %v1827_v33 = vshrl.u32 %v1809_v55, %v1825_v17  ;;  %v1830_v16 = vadd.s32 127, %v1829_v50 }
 0x41a   : > { %v1828_v25 = vor.u32 %v1827_v33, %v1826_v18  ;;  %v1831_v7 = vshll.u32 %v1830_v16, 23  ;;  %v2417_v20 = vpop.eup %2416 }
 0x41b   : > { %v2419_v9 = vpop.eup %2418  ;;  %v1957_v35 = vxor.u32 2147483648, %v2417_v20 }
 0x41c   : > { %v1832_v22 = vor.u32 4788187, %v1831_v7  ;;  %v1835_v5 = vcvt.s32.f32 %v1828_v25  ;;  %v1954_v26 = vxor.u32 2147483648, %v2419_v9 }
 0x41d   : > { %v1958_v53 = vsel %vm1956_vm2, %v1957_v35, %v2419_v9 }
 0x41e   : > { %v1833_v14 = vand.u32 2147483647, %v1832_v22  ;;  %v1955_v1 = vsel %vm1953_vm1, %v2417_v20, %v1954_v26 }
 0x41f   : > { %v1959_v27 = vsel %vm1952_vm3, %v1955_v1, %v1958_v53 }
 0x420   : > { %v1836_v39 = vmul.f32 %v1835_v5, %v1833_v14  ;;  %v1960_v6 = vsel %vm1949_vm6, nan, %v1959_v27 }
 0x422   : > { %v1837_v29 = vxor.u32 2147483648, %v1836_v39 }
 0x424   : > { %v1838_v13 = vsel %vm1755_vm15, %v1837_v29, %v1836_v39 }
 0x425   : > { %v1841_v11 = vsel %vm1754_vm0, %v3287_v10, %v1838_v13  ;;  %v1969_v10 = vrot.slane %v1964_v19, %v1968_v21 }
 0x426   : > { %2420 = vcosq.f32 %v1841_v11 }
 0x427   : > { %2422 = vsinq.f32 %v1841_v11 }
 0x430   : > { %v2421_v38 = vpop.eup %2420 }
 0x431   : > { %v2423_v4 = vpop.eup %2422  ;;  %v1853_v3 = vxor.u32 2147483648, %v2421_v38 }
 0x432   : > { %v1850_v42 = vxor.u32 2147483648, %v2423_v4 }
 0x433   : > { %v1854_v57 = vsel %vm1852_vm4, %v1853_v3, %v2423_v4 }
 0x434   : > { %v1851_v0 = vsel %vm1849_vm5, %v2421_v38, %v1850_v42 }
 0x435   : > { %v1855_v40 = vsel %vm1848_vm7, %v1851_v0, %v1854_v57 }
 0x436   : > { %v1856_v30 = vsel %vm1845_vm8, nan, %v1855_v40 }
 0x437   : > { %v2275_v36 = vpack.c.bf16 %v1960_v6, %v1856_v30 }
 0x439   : > { %2276 = vmatpush3.bf16.msra.mxu1 %v2275_v36 }
 0x43c   : > { %2253 = vmatmul.mubr.msk.f32.vlgmr.msra.gmra.mrb[4].mxu1 %vm914_vm14, %v353_v61 }
 0x50f   : > { %v2039_v8 = vpop.f32.mrb[4].mxu1 }
 0x510   : > { %v2040_v15 = vadd.f32 %v2039_v8, %v1969_v10  ;;  %v2254_v2 = vpop.f32.mrb[5].mxu1 }
 0x512   : > { %2043 = vst [vmem:[%s324_s27] sm:$0x1] %v2040_v15 }
 0x513   : > { %2437 = shalt.err (!%p2434_p3)
}
 0x514   : > { %s2438_s23 = scalar_lea.hbm %s3561_s10, 16  ;;  %s2442_s26 = scalar_lea.hbm %s3612_s9, 64 }
 0x515   : > { %p2439_p4 = scmp.ne.s32.totalorder %s3561_s10, %s2438_s23  ;;  %p2443_p9 = scmp.lt.u32.totalorder %s3561_s10, %s3612_s9 }
 0x516   : > { %p2444_p10 = scmp.lt.u32.totalorder %s2442_s26, %s2438_s23  ;;  %p2446_p12 = scmp.lt.u32.totalorder %s2438_s23, %s3561_s10 }
 0x517   : > { %p2440_p7 = pnand %p2439_p4, %p2590_p5 }
 0x518   : > { %p2445_p11 = por %p2444_p10, %p2443_p9 }
 0x519   : > { %p2441_p8 = pneg %p2440_p7 }
 0x51a   : > { %p2447_p13 = por %p2446_p12, %p2445_p11 }
 0x51c   : > { %p2448_p0 = pnand %p2447_p13, %p2441_p8 }
 0x51e   : > { %2451 = shalt.err (!%p2448_p0)
}
 0x51f   : > { %2325 = dma.vmem_to_hbm [thread:$0]  (%p2590_p5), %s3563_s28, 16, %s3561_s10, %s2045_s15  }
 0x520 PF: > { %p2331_p1 = scmp.ge.s32.totalorder %s2486_s14, 2  ;;  %s2069_s29 = sand.u32 1, %s2474_s11  }
 0x521   : > { %s2070_s17 = scalar_lea.sflag [#allocation4], %s2069_s29 }
 0x522   : > { %p2328_p2 = pnand %p2331_p1, %p2594_p6 }
 0x524   : > { %2469 = dma.done.wait (!%p2328_p2), %s2070_s17, 16  }
 0x525   : > { %2471 = vsyncadd (!%p2328_p2), %s2070_s17, 4294967280  ;;  %p21_p3 = scmp.ge.s32.totalorder %s2577_s16, 6   ;;  %s3633_s11 = smov %s2478_s12 }
 0x526   : > { %s3634_s12 = smov %s2482_s13  ;;  %s3635_s13 = smov %s2588_s19 }
 0x527   : > { %s3636_s14 = smov %s2577_s16  ;;  %23 = sbr.rel (!%p21_p3) target bundleno = 6 (0x6), region = 91 }
 0x52e   :  { %2074 = vsyncpa [#allocation4], 1 }
 0x52f   :  { %2076 = vsyncpa [#allocation4 + $0x1], 1 }

</bundles_post_ra>
